<compile_context>
chip_gen: v7x
topology: tpu7x:2x2x1
jax: 0.10.0
libtpu: 0.0.40
codegen_flags: <defaults>
</compile_context>

<pallas_src>
import functools

import numpy as np

import jax
import jax.numpy as jnp
from jax.experimental import pallas as pl
from jax.experimental.pallas import tpu as pltpu

_BN_EPS = 1e-5


def _task_branch_kernel(x_ref, mask_ref, wc_ref, bc_ref, wd_ref, bd_ref,
                        feat_ref, dec_ref, *, H, W):
    """One task branch for one batch element, in lane-dense (C, H*W) layout.

    x_ref   : (1, C, H*W)    input features (flattened NCHW)
    mask_ref: (9, 1, H*W)    0/1 edge-validity mask per 3x3 tap (zero padding)
    wc_ref  : (4, C, 9*C)    3x3 conv weights, taps flattened (ky*3+kx)*C+ci,
                             BN scale pre-folded. Order:
                             [rc1.conv1, rc1.conv2, rc2.conv1, rc2.conv2]
    bc_ref  : (4, C, 1)      folded BN biases (beta - mean*scale)
    wd_ref  : (NO, C)        decoder 1x1 conv weight
    bd_ref  : (NO, 1)        decoder bias
    feat_ref: (1, C, H*W)    out['features_<task>']
    dec_ref : (1, NO, H*W)   out[<task>]
    """
    HW = H * W
    taps = [(dy, dx) for dy in (-1, 0, 1) for dx in (-1, 0, 1)]

    def conv3x3(xf, w, b):
        # im2col via XLU lane rolls + edge masks -> single K = 9*C MXU matmul.
        cols = []
        for k, (dy, dx) in enumerate(taps):
            off = dy * W + dx
            if off == 0:
                cols.append(xf)                                   # center tap
            else:
                rolled = pltpu.roll(xf, shift=(-off) % HW, axis=1)
                cols.append(rolled * mask_ref[k])                 # zero padding
        patch = jnp.concatenate(cols, axis=0)                     # (9*C, HW)
        return jnp.dot(w, patch, preferred_element_type=jnp.float32) + b

    xf = x_ref[0].astype(jnp.float32)                             # (C, HW)

    # ResidualConv 1: conv-bn-relu-conv-bn (+ identity), relu
    y = jnp.maximum(conv3x3(xf, wc_ref[0], bc_ref[0]), 0.0)
    y = conv3x3(y, wc_ref[1], bc_ref[1])
    x1 = jnp.maximum(y + xf, 0.0)

    # ResidualConv 2
    y = jnp.maximum(conv3x3(x1, wc_ref[2], bc_ref[2]), 0.0)
    y = conv3x3(y, wc_ref[3], bc_ref[3])
    x2 = jnp.maximum(y + x1, 0.0)

    feat_ref[0] = x2.astype(feat_ref.dtype)

    # Decoder: 1x1 conv with bias == (NO, C) @ (C, HW) + b
    dec = jnp.dot(wd_ref[...], x2, preferred_element_type=jnp.float32) + bd_ref[...]
    dec_ref[0] = dec.astype(dec_ref.dtype)


def _tap_masks(H, W, dtype):
    """(9, 1, H*W) 0/1 masks marking in-bounds taps of a padding=1 3x3 conv."""
    hh, ww = np.meshgrid(np.arange(H), np.arange(W), indexing="ij")
    masks = []
    for dy in (-1, 0, 1):
        for dx in (-1, 0, 1):
            valid = ((hh + dy >= 0) & (hh + dy < H) &
                     (ww + dx >= 0) & (ww + dx < W))
            masks.append(valid.reshape(-1))
    return jnp.asarray(np.stack(masks)[:, None, :], dtype=dtype)


def _fold_task_params(tp, C):
    """Fold eval-mode BatchNorm into the 3x3 conv weights; flatten taps."""
    w = tp["conv_w"]                                       # (4, C, C, 3, 3) OIHW
    scale = tp["bn_gamma"] / jnp.sqrt(tp["bn_var"] + _BN_EPS)      # (4, C)
    # OIHW -> O,(ky,kx,I): patch row order is (ky*3+kx)*C + ci.
    w_flat = jnp.transpose(w, (0, 1, 3, 4, 2)).reshape(4, C, 9 * C)
    wc = w_flat * scale[:, :, None]                        # (4, C, 9C)
    bc = (tp["bn_beta"] - tp["bn_mean"] * scale)[:, :, None]       # (4, C, 1)
    wd = tp["dec_w"][:, :, 0, 0]                           # (NO, C)
    bd = tp["dec_b"][:, None]                              # (NO, 1)
    return wc, bc, wd, bd


def initial_task_prediction(x_nchw, params, tasks, num_outputs):
    """Forward pass of InitialTaskPrediction (features_prev_scale=None path).

    x_nchw: (B, C, H, W); params[task] holds conv/bn/decoder parameters.
    Returns {'features_<t>': (B, C, H, W), <t>: (B, num_outputs[t], H, W)}.
    """
    B, C, H, W = x_nchw.shape
    HW = H * W
    xf = x_nchw.reshape(B, C, HW)          # free reshape: stays in NCHW order
    tap_mask = _tap_masks(H, W, x_nchw.dtype)

    kernel = functools.partial(_task_branch_kernel, H=H, W=W)
    out = {}
    for t in tasks:
        NO = num_outputs[t]
        wc, bc, wd, bd = _fold_task_params(params[t], C)
        feat, dec = pl.pallas_call(
            kernel,
            out_shape=(
                jax.ShapeDtypeStruct((B, C, HW), x_nchw.dtype),
                jax.ShapeDtypeStruct((B, NO, HW), x_nchw.dtype),
            ),
            grid=(B,),
            in_specs=[
                pl.BlockSpec((1, C, HW), lambda b: (b, 0, 0)),
                pl.BlockSpec((9, 1, HW), lambda b: (0, 0, 0)),
                pl.BlockSpec((4, C, 9 * C), lambda b: (0, 0, 0)),
                pl.BlockSpec((4, C, 1), lambda b: (0, 0, 0)),
                pl.BlockSpec((NO, C), lambda b: (0, 0)),
                pl.BlockSpec((NO, 1), lambda b: (0, 0)),
            ],
            out_specs=(
                pl.BlockSpec((1, C, HW), lambda b: (b, 0, 0)),
                pl.BlockSpec((1, NO, HW), lambda b: (b, 0, 0)),
            ),
            compiler_params=pltpu.CompilerParams(
                dimension_semantics=("parallel",)),
        )(xf, tap_mask, wc, bc, wd, bd)
        out["features_%s" % t] = feat.reshape(B, C, H, W)
        out[t] = dec.reshape(B, NO, H, W)
    return out


# ----------------------------- pure-JAX reference -----------------------------

def _conv3x3_ref(x, w):
    dn = jax.lax.conv_dimension_numbers(x.shape, w.shape, ("NCHW", "OIHW", "NCHW"))
    return jax.lax.conv_general_dilated(x, w, (1, 1), "SAME",
                                        dimension_numbers=dn,
                                        precision=jax.lax.Precision.HIGHEST)


def _conv1x1_ref(x, w, b):
    dn = jax.lax.conv_dimension_numbers(x.shape, w.shape, ("NCHW", "OIHW", "NCHW"))
    y = jax.lax.conv_general_dilated(x, w, (1, 1), "VALID",
                                     dimension_numbers=dn,
                                     precision=jax.lax.Precision.HIGHEST)
    return y + b[None, :, None, None]


def _bn_ref(y, gamma, beta, mean, var):
    inv = gamma / jnp.sqrt(var + _BN_EPS)
    return y * inv[None, :, None, None] + (beta - mean * inv)[None, :, None, None]


def _residual_conv_ref(x, tp, j):
    w, g, b = tp["conv_w"], tp["bn_gamma"], tp["bn_beta"]
    m, v = tp["bn_mean"], tp["bn_var"]
    y = jax.nn.relu(_bn_ref(_conv3x3_ref(x, w[j]), g[j], b[j], m[j], v[j]))
    y = _bn_ref(_conv3x3_ref(y, w[j + 1]), g[j + 1], b[j + 1], m[j + 1], v[j + 1])
    return jax.nn.relu(y + x)


def _reference(x, params, tasks, num_outputs):
    out = {}
    for t in tasks:
        tp = params[t]
        f = _residual_conv_ref(_residual_conv_ref(x, tp, 0), tp, 2)
        out["features_%s" % t] = f
        out[t] = _conv1x1_ref(f, tp["dec_w"], tp["dec_b"])
    return out


if __name__ == "__main__":
    tasks = ("seg", "depth")
    num_outputs = {"seg": 5, "depth": 1}
    B, C, H, W = 2, 4, 16, 16             # input_channels == task_channels == 4

    key = jax.random.PRNGKey(0)
    kx, key = jax.random.split(key)
    x = jax.random.normal(kx, (B, C, H, W), dtype=jnp.float32)

    params = {}
    for i, t in enumerate(tasks):
        kt = jax.random.fold_in(key, i)
        kw, kg, kb, km, kv, kdw, kdb = jax.random.split(kt, 7)
        NO = num_outputs[t]
        params[t] = dict(
            conv_w=0.1 * jax.random.normal(kw, (4, C, C, 3, 3), jnp.float32),
            bn_gamma=1.0 + 0.1 * jax.random.normal(kg, (4, C), jnp.float32),
            bn_beta=0.1 * jax.random.normal(kb, (4, C), jnp.float32),
            bn_mean=0.1 * jax.random.normal(km, (4, C), jnp.float32),
            bn_var=1.0 + 0.1 * jax.random.uniform(kv, (4, C), jnp.float32),
            dec_w=0.1 * jax.random.normal(kdw, (NO, C, 1, 1), jnp.float32),
            dec_b=0.1 * jax.random.normal(kdb, (NO,), jnp.float32),
        )

    out = initial_task_prediction(x, params, tasks, num_outputs)
    out = jax.block_until_ready(out)

    ref = _reference(x, params, tasks, num_outputs)
    for t in tasks:
        assert out["features_%s" % t].shape == (B, C, H, W)
        assert out[t].shape == (B, num_outputs[t], H, W)
        assert jnp.allclose(out["features_%s" % t], ref["features_%s" % t],
                            atol=1e-2, rtol=1e-2), "features mismatch for %s" % t
        assert jnp.allclose(out[t], ref[t], atol=1e-2, rtol=1e-2), \
            "prediction mismatch for %s" % t

    print("KERNEL_OK")
</pallas_src>

<mosaic_0001>
module attributes {stable_mosaic.version = 11 : i64} {
  func.func @_task_branch_kernel(%arg0: i32, %arg1: memref<1x4x256xf32, #tpu.memory_space<vmem>>, %arg2: memref<9x1x256xf32, #tpu.memory_space<vmem>>, %arg3: memref<4x4x36xf32, #tpu.memory_space<vmem>>, %arg4: memref<4x4x1xf32, #tpu.memory_space<vmem>>, %arg5: memref<5x4xf32, #tpu.memory_space<vmem>>, %arg6: memref<5x1xf32, #tpu.memory_space<vmem>>, %arg7: memref<1x4x256xf32, #tpu.memory_space<vmem>>, %arg8: memref<1x5x256xf32, #tpu.memory_space<vmem>>) attributes {dimension_semantics = [#tpu.dimension_semantics<parallel>], iteration_bounds = array<i64: 2>, scalar_prefetch = 0 : i64, scratch_operands = 0 : i64, tpu.core_type = #tpu.core_type<tc>, window_params = [{transform_indices = @transform_0, window_bounds = array<i64: 1, 4, 256>}, {pipeline_mode = #tpu.pipeline_mode<synchronous>, transform_indices = @transform_1, window_bounds = array<i64: 9, 1, 256>}, {pipeline_mode = #tpu.pipeline_mode<synchronous>, transform_indices = @transform_2, window_bounds = array<i64: 4, 4, 36>}, {pipeline_mode = #tpu.pipeline_mode<synchronous>, transform_indices = @transform_3, window_bounds = array<i64: 4, 4, 1>}, {pipeline_mode = #tpu.pipeline_mode<synchronous>, transform_indices = @transform_4, window_bounds = array<i64: 5, 4>}, {pipeline_mode = #tpu.pipeline_mode<synchronous>, transform_indices = @transform_5, window_bounds = array<i64: 5, 1>}, {transform_indices = @transform_6, window_bounds = array<i64: 1, 4, 256>}, {transform_indices = @transform_7, window_bounds = array<i64: 1, 5, 256>}]} {
    %c0 = arith.constant 0 : index
    %c0_0 = arith.constant 0 : index
    %c0_1 = arith.constant 0 : index
    %0 = vector.load %arg1[%c0, %c0_0, %c0_1] : memref<1x4x256xf32, #tpu.memory_space<vmem>>, vector<1x4x256xf32>
    %1 = vector.shape_cast %0 : vector<1x4x256xf32> to vector<4x256xf32>
    %c0_2 = arith.constant 0 : index
    %c0_3 = arith.constant 0 : index
    %c0_4 = arith.constant 0 : index
    %2 = vector.load %arg3[%c0_2, %c0_3, %c0_4] : memref<4x4x36xf32, #tpu.memory_space<vmem>>, vector<1x4x36xf32>
    %3 = vector.shape_cast %2 : vector<1x4x36xf32> to vector<4x36xf32>
    %c0_5 = arith.constant 0 : index
    %c0_6 = arith.constant 0 : index
    %c0_7 = arith.constant 0 : index
    %4 = vector.load %arg4[%c0_5, %c0_6, %c0_7] : memref<4x4x1xf32, #tpu.memory_space<vmem>>, vector<1x4x1xf32>
    %5 = vector.shape_cast %4 : vector<1x4x1xf32> to vector<4x1xf32>
    %c17_i32 = arith.constant 17 : i32
    %6 = tpu.dynamic_rotate %1 by %c17_i32 dim 1 : vector<4x256xf32>, i32 -> vector<4x256xf32>
    %c0_8 = arith.constant 0 : index
    %c0_9 = arith.constant 0 : index
    %c0_10 = arith.constant 0 : index
    %7 = vector.load %arg2[%c0_8, %c0_9, %c0_10] : memref<9x1x256xf32, #tpu.memory_space<vmem>>, vector<1x1x256xf32>
    %8 = vector.shape_cast %7 : vector<1x1x256xf32> to vector<1x256xf32>
    %9 = vector.broadcast %8 : vector<1x256xf32> to vector<4x256xf32>
    %10 = arith.mulf %6, %9 : vector<4x256xf32>
    %c16_i32 = arith.constant 16 : i32
    %11 = tpu.dynamic_rotate %1 by %c16_i32 dim 1 : vector<4x256xf32>, i32 -> vector<4x256xf32>
    %c1 = arith.constant 1 : index
    %c0_11 = arith.constant 0 : index
    %c0_12 = arith.constant 0 : index
    %12 = vector.load %arg2[%c1, %c0_11, %c0_12] : memref<9x1x256xf32, #tpu.memory_space<vmem>>, vector<1x1x256xf32>
    %13 = vector.shape_cast %12 : vector<1x1x256xf32> to vector<1x256xf32>
    %14 = vector.broadcast %13 : vector<1x256xf32> to vector<4x256xf32>
    %15 = arith.mulf %11, %14 : vector<4x256xf32>
    %c15_i32 = arith.constant 15 : i32
    %16 = tpu.dynamic_rotate %1 by %c15_i32 dim 1 : vector<4x256xf32>, i32 -> vector<4x256xf32>
    %c2 = arith.constant 2 : index
    %c0_13 = arith.constant 0 : index
    %c0_14 = arith.constant 0 : index
    %17 = vector.load %arg2[%c2, %c0_13, %c0_14] : memref<9x1x256xf32, #tpu.memory_space<vmem>>, vector<1x1x256xf32>
    %18 = vector.shape_cast %17 : vector<1x1x256xf32> to vector<1x256xf32>
    %19 = vector.broadcast %18 : vector<1x256xf32> to vector<4x256xf32>
    %20 = arith.mulf %16, %19 : vector<4x256xf32>
    %c1_i32 = arith.constant 1 : i32
    %21 = tpu.dynamic_rotate %1 by %c1_i32 dim 1 : vector<4x256xf32>, i32 -> vector<4x256xf32>
    %c3 = arith.constant 3 : index
    %c0_15 = arith.constant 0 : index
    %c0_16 = arith.constant 0 : index
    %22 = vector.load %arg2[%c3, %c0_15, %c0_16] : memref<9x1x256xf32, #tpu.memory_space<vmem>>, vector<1x1x256xf32>
    %23 = vector.shape_cast %22 : vector<1x1x256xf32> to vector<1x256xf32>
    %24 = vector.broadcast %23 : vector<1x256xf32> to vector<4x256xf32>
    %25 = arith.mulf %21, %24 : vector<4x256xf32>
    %c255_i32 = arith.constant 255 : i32
    %26 = tpu.dynamic_rotate %1 by %c255_i32 dim 1 : vector<4x256xf32>, i32 -> vector<4x256xf32>
    %c5 = arith.constant 5 : index
    %c0_17 = arith.constant 0 : index
    %c0_18 = arith.constant 0 : index
    %27 = vector.load %arg2[%c5, %c0_17, %c0_18] : memref<9x1x256xf32, #tpu.memory_space<vmem>>, vector<1x1x256xf32>
    %28 = vector.shape_cast %27 : vector<1x1x256xf32> to vector<1x256xf32>
    %29 = vector.broadcast %28 : vector<1x256xf32> to vector<4x256xf32>
    %30 = arith.mulf %26, %29 : vector<4x256xf32>
    %c241_i32 = arith.constant 241 : i32
    %31 = tpu.dynamic_rotate %1 by %c241_i32 dim 1 : vector<4x256xf32>, i32 -> vector<4x256xf32>
    %c6 = arith.constant 6 : index
    %c0_19 = arith.constant 0 : index
    %c0_20 = arith.constant 0 : index
    %32 = vector.load %arg2[%c6, %c0_19, %c0_20] : memref<9x1x256xf32, #tpu.memory_space<vmem>>, vector<1x1x256xf32>
    %33 = vector.shape_cast %32 : vector<1x1x256xf32> to vector<1x256xf32>
    %34 = vector.broadcast %33 : vector<1x256xf32> to vector<4x256xf32>
    %35 = arith.mulf %31, %34 : vector<4x256xf32>
    %c240_i32 = arith.constant 240 : i32
    %36 = tpu.dynamic_rotate %1 by %c240_i32 dim 1 : vector<4x256xf32>, i32 -> vector<4x256xf32>
    %c7 = arith.constant 7 : index
    %c0_21 = arith.constant 0 : index
    %c0_22 = arith.constant 0 : index
    %37 = vector.load %arg2[%c7, %c0_21, %c0_22] : memref<9x1x256xf32, #tpu.memory_space<vmem>>, vector<1x1x256xf32>
    %38 = vector.shape_cast %37 : vector<1x1x256xf32> to vector<1x256xf32>
    %39 = vector.broadcast %38 : vector<1x256xf32> to vector<4x256xf32>
    %40 = arith.mulf %36, %39 : vector<4x256xf32>
    %c239_i32 = arith.constant 239 : i32
    %41 = tpu.dynamic_rotate %1 by %c239_i32 dim 1 : vector<4x256xf32>, i32 -> vector<4x256xf32>
    %c8 = arith.constant 8 : index
    %c0_23 = arith.constant 0 : index
    %c0_24 = arith.constant 0 : index
    %42 = vector.load %arg2[%c8, %c0_23, %c0_24] : memref<9x1x256xf32, #tpu.memory_space<vmem>>, vector<1x1x256xf32>
    %43 = vector.shape_cast %42 : vector<1x1x256xf32> to vector<1x256xf32>
    %44 = vector.broadcast %43 : vector<1x256xf32> to vector<4x256xf32>
    %45 = arith.mulf %41, %44 : vector<4x256xf32>
    %46 = tpu.concatenate %10, %15, %20, %25, %1, %30, %35, %40, %45 in 0 : vector<4x256xf32>, vector<4x256xf32>, vector<4x256xf32>, vector<4x256xf32>, vector<4x256xf32>, vector<4x256xf32>, vector<4x256xf32>, vector<4x256xf32>, vector<4x256xf32> -> vector<36x256xf32>
    %cst = arith.constant dense<0.000000e+00> : vector<4x256xf32>
    %47 = tpu.matmul %3, %46, %cst {dimension_numbers = #tpu.dot_dimension_numbers<[1], [0], [0], [1], [0, 0, 1, 1], [], []>} : vector<4x36xf32>, vector<36x256xf32>, vector<4x256xf32> -> vector<4x256xf32>
    %48 = vector.broadcast %5 : vector<4x1xf32> to vector<4x256xf32>
    %49 = arith.addf %47, %48 : vector<4x256xf32>
    %cst_25 = arith.constant 0.000000e+00 : f32
    %50 = vector.broadcast %cst_25 : f32 to vector<4x256xf32>
    %51 = arith.maximumf %49, %50 : vector<4x256xf32>
    %c1_26 = arith.constant 1 : index
    %c0_27 = arith.constant 0 : index
    %c0_28 = arith.constant 0 : index
    %52 = vector.load %arg3[%c1_26, %c0_27, %c0_28] : memref<4x4x36xf32, #tpu.memory_space<vmem>>, vector<1x4x36xf32>
    %53 = vector.shape_cast %52 : vector<1x4x36xf32> to vector<4x36xf32>
    %c1_29 = arith.constant 1 : index
    %c0_30 = arith.constant 0 : index
    %c0_31 = arith.constant 0 : index
    %54 = vector.load %arg4[%c1_29, %c0_30, %c0_31] : memref<4x4x1xf32, #tpu.memory_space<vmem>>, vector<1x4x1xf32>
    %55 = vector.shape_cast %54 : vector<1x4x1xf32> to vector<4x1xf32>
    %c17_i32_32 = arith.constant 17 : i32
    %56 = tpu.dynamic_rotate %51 by %c17_i32_32 dim 1 : vector<4x256xf32>, i32 -> vector<4x256xf32>
    %c0_33 = arith.constant 0 : index
    %c0_34 = arith.constant 0 : index
    %c0_35 = arith.constant 0 : index
    %57 = vector.load %arg2[%c0_33, %c0_34, %c0_35] : memref<9x1x256xf32, #tpu.memory_space<vmem>>, vector<1x1x256xf32>
    %58 = vector.shape_cast %57 : vector<1x1x256xf32> to vector<1x256xf32>
    %59 = vector.broadcast %58 : vector<1x256xf32> to vector<4x256xf32>
    %60 = arith.mulf %56, %59 : vector<4x256xf32>
    %c16_i32_36 = arith.constant 16 : i32
    %61 = tpu.dynamic_rotate %51 by %c16_i32_36 dim 1 : vector<4x256xf32>, i32 -> vector<4x256xf32>
    %c1_37 = arith.constant 1 : index
    %c0_38 = arith.constant 0 : index
    %c0_39 = arith.constant 0 : index
    %62 = vector.load %arg2[%c1_37, %c0_38, %c0_39] : memref<9x1x256xf32, #tpu.memory_space<vmem>>, vector<1x1x256xf32>
    %63 = vector.shape_cast %62 : vector<1x1x256xf32> to vector<1x256xf32>
    %64 = vector.broadcast %63 : vector<1x256xf32> to vector<4x256xf32>
    %65 = arith.mulf %61, %64 : vector<4x256xf32>
    %c15_i32_40 = arith.constant 15 : i32
    %66 = tpu.dynamic_rotate %51 by %c15_i32_40 dim 1 : vector<4x256xf32>, i32 -> vector<4x256xf32>
    %c2_41 = arith.constant 2 : index
    %c0_42 = arith.constant 0 : index
    %c0_43 = arith.constant 0 : index
    %67 = vector.load %arg2[%c2_41, %c0_42, %c0_43] : memref<9x1x256xf32, #tpu.memory_space<vmem>>, vector<1x1x256xf32>
    %68 = vector.shape_cast %67 : vector<1x1x256xf32> to vector<1x256xf32>
    %69 = vector.broadcast %68 : vector<1x256xf32> to vector<4x256xf32>
    %70 = arith.mulf %66, %69 : vector<4x256xf32>
    %c1_i32_44 = arith.constant 1 : i32
    %71 = tpu.dynamic_rotate %51 by %c1_i32_44 dim 1 : vector<4x256xf32>, i32 -> vector<4x256xf32>
    %c3_45 = arith.constant 3 : index
    %c0_46 = arith.constant 0 : index
    %c0_47 = arith.constant 0 : index
    %72 = vector.load %arg2[%c3_45, %c0_46, %c0_47] : memref<9x1x256xf32, #tpu.memory_space<vmem>>, vector<1x1x256xf32>
    %73 = vector.shape_cast %72 : vector<1x1x256xf32> to vector<1x256xf32>
    %74 = vector.broadcast %73 : vector<1x256xf32> to vector<4x256xf32>
    %75 = arith.mulf %71, %74 : vector<4x256xf32>
    %c255_i32_48 = arith.constant 255 : i32
    %76 = tpu.dynamic_rotate %51 by %c255_i32_48 dim 1 : vector<4x256xf32>, i32 -> vector<4x256xf32>
    %c5_49 = arith.constant 5 : index
    %c0_50 = arith.constant 0 : index
    %c0_51 = arith.constant 0 : index
    %77 = vector.load %arg2[%c5_49, %c0_50, %c0_51] : memref<9x1x256xf32, #tpu.memory_space<vmem>>, vector<1x1x256xf32>
    %78 = vector.shape_cast %77 : vector<1x1x256xf32> to vector<1x256xf32>
    %79 = vector.broadcast %78 : vector<1x256xf32> to vector<4x256xf32>
    %80 = arith.mulf %76, %79 : vector<4x256xf32>
    %c241_i32_52 = arith.constant 241 : i32
    %81 = tpu.dynamic_rotate %51 by %c241_i32_52 dim 1 : vector<4x256xf32>, i32 -> vector<4x256xf32>
    %c6_53 = arith.constant 6 : index
    %c0_54 = arith.constant 0 : index
    %c0_55 = arith.constant 0 : index
    %82 = vector.load %arg2[%c6_53, %c0_54, %c0_55] : memref<9x1x256xf32, #tpu.memory_space<vmem>>, vector<1x1x256xf32>
    %83 = vector.shape_cast %82 : vector<1x1x256xf32> to vector<1x256xf32>
    %84 = vector.broadcast %83 : vector<1x256xf32> to vector<4x256xf32>
    %85 = arith.mulf %81, %84 : vector<4x256xf32>
    %c240_i32_56 = arith.constant 240 : i32
    %86 = tpu.dynamic_rotate %51 by %c240_i32_56 dim 1 : vector<4x256xf32>, i32 -> vector<4x256xf32>
    %c7_57 = arith.constant 7 : index
    %c0_58 = arith.constant 0 : index
    %c0_59 = arith.constant 0 : index
    %87 = vector.load %arg2[%c7_57, %c0_58, %c0_59] : memref<9x1x256xf32, #tpu.memory_space<vmem>>, vector<1x1x256xf32>
    %88 = vector.shape_cast %87 : vector<1x1x256xf32> to vector<1x256xf32>
    %89 = vector.broadcast %88 : vector<1x256xf32> to vector<4x256xf32>
    %90 = arith.mulf %86, %89 : vector<4x256xf32>
    %c239_i32_60 = arith.constant 239 : i32
    %91 = tpu.dynamic_rotate %51 by %c239_i32_60 dim 1 : vector<4x256xf32>, i32 -> vector<4x256xf32>
    %c8_61 = arith.constant 8 : index
    %c0_62 = arith.constant 0 : index
    %c0_63 = arith.constant 0 : index
    %92 = vector.load %arg2[%c8_61, %c0_62, %c0_63] : memref<9x1x256xf32, #tpu.memory_space<vmem>>, vector<1x1x256xf32>
    %93 = vector.shape_cast %92 : vector<1x1x256xf32> to vector<1x256xf32>
    %94 = vector.broadcast %93 : vector<1x256xf32> to vector<4x256xf32>
    %95 = arith.mulf %91, %94 : vector<4x256xf32>
    %96 = tpu.concatenate %60, %65, %70, %75, %51, %80, %85, %90, %95 in 0 : vector<4x256xf32>, vector<4x256xf32>, vector<4x256xf32>, vector<4x256xf32>, vector<4x256xf32>, vector<4x256xf32>, vector<4x256xf32>, vector<4x256xf32>, vector<4x256xf32> -> vector<36x256xf32>
    %cst_64 = arith.constant dense<0.000000e+00> : vector<4x256xf32>
    %97 = tpu.matmul %53, %96, %cst_64 {dimension_numbers = #tpu.dot_dimension_numbers<[1], [0], [0], [1], [0, 0, 1, 1], [], []>} : vector<4x36xf32>, vector<36x256xf32>, vector<4x256xf32> -> vector<4x256xf32>
    %98 = vector.broadcast %55 : vector<4x1xf32> to vector<4x256xf32>
    %99 = arith.addf %97, %98 : vector<4x256xf32>
    %100 = arith.addf %99, %1 : vector<4x256xf32>
    %cst_65 = arith.constant 0.000000e+00 : f32
    %101 = vector.broadcast %cst_65 : f32 to vector<4x256xf32>
    %102 = arith.maximumf %100, %101 : vector<4x256xf32>
    %c2_66 = arith.constant 2 : index
    %c0_67 = arith.constant 0 : index
    %c0_68 = arith.constant 0 : index
    %103 = vector.load %arg3[%c2_66, %c0_67, %c0_68] : memref<4x4x36xf32, #tpu.memory_space<vmem>>, vector<1x4x36xf32>
    %104 = vector.shape_cast %103 : vector<1x4x36xf32> to vector<4x36xf32>
    %c2_69 = arith.constant 2 : index
    %c0_70 = arith.constant 0 : index
    %c0_71 = arith.constant 0 : index
    %105 = vector.load %arg4[%c2_69, %c0_70, %c0_71] : memref<4x4x1xf32, #tpu.memory_space<vmem>>, vector<1x4x1xf32>
    %106 = vector.shape_cast %105 : vector<1x4x1xf32> to vector<4x1xf32>
    %c17_i32_72 = arith.constant 17 : i32
    %107 = tpu.dynamic_rotate %102 by %c17_i32_72 dim 1 : vector<4x256xf32>, i32 -> vector<4x256xf32>
    %c0_73 = arith.constant 0 : index
    %c0_74 = arith.constant 0 : index
    %c0_75 = arith.constant 0 : index
    %108 = vector.load %arg2[%c0_73, %c0_74, %c0_75] : memref<9x1x256xf32, #tpu.memory_space<vmem>>, vector<1x1x256xf32>
    %109 = vector.shape_cast %108 : vector<1x1x256xf32> to vector<1x256xf32>
    %110 = vector.broadcast %109 : vector<1x256xf32> to vector<4x256xf32>
    %111 = arith.mulf %107, %110 : vector<4x256xf32>
    %c16_i32_76 = arith.constant 16 : i32
    %112 = tpu.dynamic_rotate %102 by %c16_i32_76 dim 1 : vector<4x256xf32>, i32 -> vector<4x256xf32>
    %c1_77 = arith.constant 1 : index
    %c0_78 = arith.constant 0 : index
    %c0_79 = arith.constant 0 : index
    %113 = vector.load %arg2[%c1_77, %c0_78, %c0_79] : memref<9x1x256xf32, #tpu.memory_space<vmem>>, vector<1x1x256xf32>
    %114 = vector.shape_cast %113 : vector<1x1x256xf32> to vector<1x256xf32>
    %115 = vector.broadcast %114 : vector<1x256xf32> to vector<4x256xf32>
    %116 = arith.mulf %112, %115 : vector<4x256xf32>
    %c15_i32_80 = arith.constant 15 : i32
    %117 = tpu.dynamic_rotate %102 by %c15_i32_80 dim 1 : vector<4x256xf32>, i32 -> vector<4x256xf32>
    %c2_81 = arith.constant 2 : index
    %c0_82 = arith.constant 0 : index
    %c0_83 = arith.constant 0 : index
    %118 = vector.load %arg2[%c2_81, %c0_82, %c0_83] : memref<9x1x256xf32, #tpu.memory_space<vmem>>, vector<1x1x256xf32>
    %119 = vector.shape_cast %118 : vector<1x1x256xf32> to vector<1x256xf32>
    %120 = vector.broadcast %119 : vector<1x256xf32> to vector<4x256xf32>
    %121 = arith.mulf %117, %120 : vector<4x256xf32>
    %c1_i32_84 = arith.constant 1 : i32
    %122 = tpu.dynamic_rotate %102 by %c1_i32_84 dim 1 : vector<4x256xf32>, i32 -> vector<4x256xf32>
    %c3_85 = arith.constant 3 : index
    %c0_86 = arith.constant 0 : index
    %c0_87 = arith.constant 0 : index
    %123 = vector.load %arg2[%c3_85, %c0_86, %c0_87] : memref<9x1x256xf32, #tpu.memory_space<vmem>>, vector<1x1x256xf32>
    %124 = vector.shape_cast %123 : vector<1x1x256xf32> to vector<1x256xf32>
    %125 = vector.broadcast %124 : vector<1x256xf32> to vector<4x256xf32>
    %126 = arith.mulf %122, %125 : vector<4x256xf32>
    %c255_i32_88 = arith.constant 255 : i32
    %127 = tpu.dynamic_rotate %102 by %c255_i32_88 dim 1 : vector<4x256xf32>, i32 -> vector<4x256xf32>
    %c5_89 = arith.constant 5 : index
    %c0_90 = arith.constant 0 : index
    %c0_91 = arith.constant 0 : index
    %128 = vector.load %arg2[%c5_89, %c0_90, %c0_91] : memref<9x1x256xf32, #tpu.memory_space<vmem>>, vector<1x1x256xf32>
    %129 = vector.shape_cast %128 : vector<1x1x256xf32> to vector<1x256xf32>
    %130 = vector.broadcast %129 : vector<1x256xf32> to vector<4x256xf32>
    %131 = arith.mulf %127, %130 : vector<4x256xf32>
    %c241_i32_92 = arith.constant 241 : i32
    %132 = tpu.dynamic_rotate %102 by %c241_i32_92 dim 1 : vector<4x256xf32>, i32 -> vector<4x256xf32>
    %c6_93 = arith.constant 6 : index
    %c0_94 = arith.constant 0 : index
    %c0_95 = arith.constant 0 : index
    %133 = vector.load %arg2[%c6_93, %c0_94, %c0_95] : memref<9x1x256xf32, #tpu.memory_space<vmem>>, vector<1x1x256xf32>
    %134 = vector.shape_cast %133 : vector<1x1x256xf32> to vector<1x256xf32>
    %135 = vector.broadcast %134 : vector<1x256xf32> to vector<4x256xf32>
    %136 = arith.mulf %132, %135 : vector<4x256xf32>
    %c240_i32_96 = arith.constant 240 : i32
    %137 = tpu.dynamic_rotate %102 by %c240_i32_96 dim 1 : vector<4x256xf32>, i32 -> vector<4x256xf32>
    %c7_97 = arith.constant 7 : index
    %c0_98 = arith.constant 0 : index
    %c0_99 = arith.constant 0 : index
    %138 = vector.load %arg2[%c7_97, %c0_98, %c0_99] : memref<9x1x256xf32, #tpu.memory_space<vmem>>, vector<1x1x256xf32>
    %139 = vector.shape_cast %138 : vector<1x1x256xf32> to vector<1x256xf32>
    %140 = vector.broadcast %139 : vector<1x256xf32> to vector<4x256xf32>
    %141 = arith.mulf %137, %140 : vector<4x256xf32>
    %c239_i32_100 = arith.constant 239 : i32
    %142 = tpu.dynamic_rotate %102 by %c239_i32_100 dim 1 : vector<4x256xf32>, i32 -> vector<4x256xf32>
    %c8_101 = arith.constant 8 : index
    %c0_102 = arith.constant 0 : index
    %c0_103 = arith.constant 0 : index
    %143 = vector.load %arg2[%c8_101, %c0_102, %c0_103] : memref<9x1x256xf32, #tpu.memory_space<vmem>>, vector<1x1x256xf32>
    %144 = vector.shape_cast %143 : vector<1x1x256xf32> to vector<1x256xf32>
    %145 = vector.broadcast %144 : vector<1x256xf32> to vector<4x256xf32>
    %146 = arith.mulf %142, %145 : vector<4x256xf32>
    %147 = tpu.concatenate %111, %116, %121, %126, %102, %131, %136, %141, %146 in 0 : vector<4x256xf32>, vector<4x256xf32>, vector<4x256xf32>, vector<4x256xf32>, vector<4x256xf32>, vector<4x256xf32>, vector<4x256xf32>, vector<4x256xf32>, vector<4x256xf32> -> vector<36x256xf32>
    %cst_104 = arith.constant dense<0.000000e+00> : vector<4x256xf32>
    %148 = tpu.matmul %104, %147, %cst_104 {dimension_numbers = #tpu.dot_dimension_numbers<[1], [0], [0], [1], [0, 0, 1, 1], [], []>} : vector<4x36xf32>, vector<36x256xf32>, vector<4x256xf32> -> vector<4x256xf32>
    %149 = vector.broadcast %106 : vector<4x1xf32> to vector<4x256xf32>
    %150 = arith.addf %148, %149 : vector<4x256xf32>
    %cst_105 = arith.constant 0.000000e+00 : f32
    %151 = vector.broadcast %cst_105 : f32 to vector<4x256xf32>
    %152 = arith.maximumf %150, %151 : vector<4x256xf32>
    %c3_106 = arith.constant 3 : index
    %c0_107 = arith.constant 0 : index
    %c0_108 = arith.constant 0 : index
    %153 = vector.load %arg3[%c3_106, %c0_107, %c0_108] : memref<4x4x36xf32, #tpu.memory_space<vmem>>, vector<1x4x36xf32>
    %154 = vector.shape_cast %153 : vector<1x4x36xf32> to vector<4x36xf32>
    %c3_109 = arith.constant 3 : index
    %c0_110 = arith.constant 0 : index
    %c0_111 = arith.constant 0 : index
    %155 = vector.load %arg4[%c3_109, %c0_110, %c0_111] : memref<4x4x1xf32, #tpu.memory_space<vmem>>, vector<1x4x1xf32>
    %156 = vector.shape_cast %155 : vector<1x4x1xf32> to vector<4x1xf32>
    %c17_i32_112 = arith.constant 17 : i32
    %157 = tpu.dynamic_rotate %152 by %c17_i32_112 dim 1 : vector<4x256xf32>, i32 -> vector<4x256xf32>
    %c0_113 = arith.constant 0 : index
    %c0_114 = arith.constant 0 : index
    %c0_115 = arith.constant 0 : index
    %158 = vector.load %arg2[%c0_113, %c0_114, %c0_115] : memref<9x1x256xf32, #tpu.memory_space<vmem>>, vector<1x1x256xf32>
    %159 = vector.shape_cast %158 : vector<1x1x256xf32> to vector<1x256xf32>
    %160 = vector.broadcast %159 : vector<1x256xf32> to vector<4x256xf32>
    %161 = arith.mulf %157, %160 : vector<4x256xf32>
    %c16_i32_116 = arith.constant 16 : i32
    %162 = tpu.dynamic_rotate %152 by %c16_i32_116 dim 1 : vector<4x256xf32>, i32 -> vector<4x256xf32>
    %c1_117 = arith.constant 1 : index
    %c0_118 = arith.constant 0 : index
    %c0_119 = arith.constant 0 : index
    %163 = vector.load %arg2[%c1_117, %c0_118, %c0_119] : memref<9x1x256xf32, #tpu.memory_space<vmem>>, vector<1x1x256xf32>
    %164 = vector.shape_cast %163 : vector<1x1x256xf32> to vector<1x256xf32>
    %165 = vector.broadcast %164 : vector<1x256xf32> to vector<4x256xf32>
    %166 = arith.mulf %162, %165 : vector<4x256xf32>
    %c15_i32_120 = arith.constant 15 : i32
    %167 = tpu.dynamic_rotate %152 by %c15_i32_120 dim 1 : vector<4x256xf32>, i32 -> vector<4x256xf32>
    %c2_121 = arith.constant 2 : index
    %c0_122 = arith.constant 0 : index
    %c0_123 = arith.constant 0 : index
    %168 = vector.load %arg2[%c2_121, %c0_122, %c0_123] : memref<9x1x256xf32, #tpu.memory_space<vmem>>, vector<1x1x256xf32>
    %169 = vector.shape_cast %168 : vector<1x1x256xf32> to vector<1x256xf32>
    %170 = vector.broadcast %169 : vector<1x256xf32> to vector<4x256xf32>
    %171 = arith.mulf %167, %170 : vector<4x256xf32>
    %c1_i32_124 = arith.constant 1 : i32
    %172 = tpu.dynamic_rotate %152 by %c1_i32_124 dim 1 : vector<4x256xf32>, i32 -> vector<4x256xf32>
    %c3_125 = arith.constant 3 : index
    %c0_126 = arith.constant 0 : index
    %c0_127 = arith.constant 0 : index
    %173 = vector.load %arg2[%c3_125, %c0_126, %c0_127] : memref<9x1x256xf32, #tpu.memory_space<vmem>>, vector<1x1x256xf32>
    %174 = vector.shape_cast %173 : vector<1x1x256xf32> to vector<1x256xf32>
    %175 = vector.broadcast %174 : vector<1x256xf32> to vector<4x256xf32>
    %176 = arith.mulf %172, %175 : vector<4x256xf32>
    %c255_i32_128 = arith.constant 255 : i32
    %177 = tpu.dynamic_rotate %152 by %c255_i32_128 dim 1 : vector<4x256xf32>, i32 -> vector<4x256xf32>
    %c5_129 = arith.constant 5 : index
    %c0_130 = arith.constant 0 : index
    %c0_131 = arith.constant 0 : index
    %178 = vector.load %arg2[%c5_129, %c0_130, %c0_131] : memref<9x1x256xf32, #tpu.memory_space<vmem>>, vector<1x1x256xf32>
    %179 = vector.shape_cast %178 : vector<1x1x256xf32> to vector<1x256xf32>
    %180 = vector.broadcast %179 : vector<1x256xf32> to vector<4x256xf32>
    %181 = arith.mulf %177, %180 : vector<4x256xf32>
    %c241_i32_132 = arith.constant 241 : i32
    %182 = tpu.dynamic_rotate %152 by %c241_i32_132 dim 1 : vector<4x256xf32>, i32 -> vector<4x256xf32>
    %c6_133 = arith.constant 6 : index
    %c0_134 = arith.constant 0 : index
    %c0_135 = arith.constant 0 : index
    %183 = vector.load %arg2[%c6_133, %c0_134, %c0_135] : memref<9x1x256xf32, #tpu.memory_space<vmem>>, vector<1x1x256xf32>
    %184 = vector.shape_cast %183 : vector<1x1x256xf32> to vector<1x256xf32>
    %185 = vector.broadcast %184 : vector<1x256xf32> to vector<4x256xf32>
    %186 = arith.mulf %182, %185 : vector<4x256xf32>
    %c240_i32_136 = arith.constant 240 : i32
    %187 = tpu.dynamic_rotate %152 by %c240_i32_136 dim 1 : vector<4x256xf32>, i32 -> vector<4x256xf32>
    %c7_137 = arith.constant 7 : index
    %c0_138 = arith.constant 0 : index
    %c0_139 = arith.constant 0 : index
    %188 = vector.load %arg2[%c7_137, %c0_138, %c0_139] : memref<9x1x256xf32, #tpu.memory_space<vmem>>, vector<1x1x256xf32>
    %189 = vector.shape_cast %188 : vector<1x1x256xf32> to vector<1x256xf32>
    %190 = vector.broadcast %189 : vector<1x256xf32> to vector<4x256xf32>
    %191 = arith.mulf %187, %190 : vector<4x256xf32>
    %c239_i32_140 = arith.constant 239 : i32
    %192 = tpu.dynamic_rotate %152 by %c239_i32_140 dim 1 : vector<4x256xf32>, i32 -> vector<4x256xf32>
    %c8_141 = arith.constant 8 : index
    %c0_142 = arith.constant 0 : index
    %c0_143 = arith.constant 0 : index
    %193 = vector.load %arg2[%c8_141, %c0_142, %c0_143] : memref<9x1x256xf32, #tpu.memory_space<vmem>>, vector<1x1x256xf32>
    %194 = vector.shape_cast %193 : vector<1x1x256xf32> to vector<1x256xf32>
    %195 = vector.broadcast %194 : vector<1x256xf32> to vector<4x256xf32>
    %196 = arith.mulf %192, %195 : vector<4x256xf32>
    %197 = tpu.concatenate %161, %166, %171, %176, %152, %181, %186, %191, %196 in 0 : vector<4x256xf32>, vector<4x256xf32>, vector<4x256xf32>, vector<4x256xf32>, vector<4x256xf32>, vector<4x256xf32>, vector<4x256xf32>, vector<4x256xf32>, vector<4x256xf32> -> vector<36x256xf32>
    %cst_144 = arith.constant dense<0.000000e+00> : vector<4x256xf32>
    %198 = tpu.matmul %154, %197, %cst_144 {dimension_numbers = #tpu.dot_dimension_numbers<[1], [0], [0], [1], [0, 0, 1, 1], [], []>} : vector<4x36xf32>, vector<36x256xf32>, vector<4x256xf32> -> vector<4x256xf32>
    %199 = vector.broadcast %156 : vector<4x1xf32> to vector<4x256xf32>
    %200 = arith.addf %198, %199 : vector<4x256xf32>
    %201 = arith.addf %200, %102 : vector<4x256xf32>
    %cst_145 = arith.constant 0.000000e+00 : f32
    %202 = vector.broadcast %cst_145 : f32 to vector<4x256xf32>
    %203 = arith.maximumf %201, %202 : vector<4x256xf32>
    %c0_146 = arith.constant 0 : index
    %c0_147 = arith.constant 0 : index
    %c0_148 = arith.constant 0 : index
    %204 = vector.load %arg7[%c0_146, %c0_147, %c0_148] : memref<1x4x256xf32, #tpu.memory_space<vmem>>, vector<1x4x256xf32>
    %205 = vector.shape_cast %204 : vector<1x4x256xf32> to vector<4x256xf32>
    %206 = vector.shape_cast %203 : vector<4x256xf32> to vector<1x4x256xf32>
    tpu.vector_store %arg7[%c0_146, %c0_147, %c0_148], %206 {strides = array<i32>} : memref<1x4x256xf32, #tpu.memory_space<vmem>>, vector<1x4x256xf32>,
    %c0_149 = arith.constant 0 : index
    %c0_150 = arith.constant 0 : index
    %207 = vector.load %arg5[%c0_149, %c0_150] : memref<5x4xf32, #tpu.memory_space<vmem>>, vector<5x4xf32>
    %cst_151 = arith.constant dense<0.000000e+00> : vector<5x256xf32>
    %208 = tpu.matmul %207, %203, %cst_151 {dimension_numbers = #tpu.dot_dimension_numbers<[1], [0], [0], [1], [0, 0, 1, 1], [], []>} : vector<5x4xf32>, vector<4x256xf32>, vector<5x256xf32> -> vector<5x256xf32>
    %c0_152 = arith.constant 0 : index
    %c0_153 = arith.constant 0 : index
    %209 = vector.load %arg6[%c0_152, %c0_153] : memref<5x1xf32, #tpu.memory_space<vmem>>, vector<5x1xf32>
    %210 = vector.broadcast %209 : vector<5x1xf32> to vector<5x256xf32>
    %211 = arith.addf %208, %210 : vector<5x256xf32>
    %c0_154 = arith.constant 0 : index
    %c0_155 = arith.constant 0 : index
    %c0_156 = arith.constant 0 : index
    %212 = vector.load %arg8[%c0_154, %c0_155, %c0_156] : memref<1x5x256xf32, #tpu.memory_space<vmem>>, vector<1x5x256xf32>
    %213 = vector.shape_cast %212 : vector<1x5x256xf32> to vector<5x256xf32>
    %214 = vector.shape_cast %211 : vector<5x256xf32> to vector<1x5x256xf32>
    tpu.vector_store %arg8[%c0_154, %c0_155, %c0_156], %214 {strides = array<i32>} : memref<1x5x256xf32, #tpu.memory_space<vmem>>, vector<1x5x256xf32>,
    return
  }
  func.func @transform_0(%arg0: i32) -> (i32, i32, i32) {
    %c0_i32 = arith.constant 0 : i32
    %c0_i32_0 = arith.constant 0 : i32
    %c0_i32_1 = arith.constant 0 : i32
    return %arg0, %c0_i32, %c0_i32_0 : i32, i32, i32
  }
  func.func @transform_1(%arg0: i32) -> (i32, i32, i32) {
    %c0_i32 = arith.constant 0 : i32
    %c0_i32_0 = arith.constant 0 : i32
    %c0_i32_1 = arith.constant 0 : i32
    %c0_i32_2 = arith.constant 0 : i32
    return %c0_i32, %c0_i32_0, %c0_i32_1 : i32, i32, i32
  }
  func.func @transform_2(%arg0: i32) -> (i32, i32, i32) {
    %c0_i32 = arith.constant 0 : i32
    %c0_i32_0 = arith.constant 0 : i32
    %c0_i32_1 = arith.constant 0 : i32
    %c0_i32_2 = arith.constant 0 : i32
    return %c0_i32, %c0_i32_0, %c0_i32_1 : i32, i32, i32
  }
  func.func @transform_3(%arg0: i32) -> (i32, i32, i32) {
    %c0_i32 = arith.constant 0 : i32
    %c0_i32_0 = arith.constant 0 : i32
    %c0_i32_1 = arith.constant 0 : i32
    %c0_i32_2 = arith.constant 0 : i32
    return %c0_i32, %c0_i32_0, %c0_i32_1 : i32, i32, i32
  }
  func.func @transform_4(%arg0: i32) -> (i32, i32) {
    %c0_i32 = arith.constant 0 : i32
    %c0_i32_0 = arith.constant 0 : i32
    %c0_i32_1 = arith.constant 0 : i32
    return %c0_i32, %c0_i32_0 : i32, i32
  }
  func.func @transform_5(%arg0: i32) -> (i32, i32) {
    %c0_i32 = arith.constant 0 : i32
    %c0_i32_0 = arith.constant 0 : i32
    %c0_i32_1 = arith.constant 0 : i32
    return %c0_i32, %c0_i32_0 : i32, i32
  }
  func.func @transform_6(%arg0: i32) -> (i32, i32, i32) {
    %c0_i32 = arith.constant 0 : i32
    %c0_i32_0 = arith.constant 0 : i32
    %c0_i32_1 = arith.constant 0 : i32
    return %arg0, %c0_i32, %c0_i32_0 : i32, i32, i32
  }
  func.func @transform_7(%arg0: i32) -> (i32, i32, i32) {
    %c0_i32 = arith.constant 0 : i32
    %c0_i32_0 = arith.constant 0 : i32
    %c0_i32_1 = arith.constant 0 : i32
    return %arg0, %c0_i32, %c0_i32_0 : i32, i32, i32
  }
}

</mosaic_0001>

<bundles_post_ra>
// kernel: tpu_custom_call.1
= control target key start
LH: loop header
LB: loop body
LE: loop exit
PB: predicated region body
PF: predicated region fallthrough
CT: control target
= control target key end

     0   :  { %13 = vsyncpa [#allocation3], 0  ;;  %s2318_s0 = inlined_call_operand.vmem [shape: f32[2,4,256], index: 0, kind: input, shape index: {}]   ;;  %s2319_s1 = inlined_call_operand.vmem [shape: f32[9,1,256], index: 1, kind: input, shape index: {}]   ;;  %s2320_s2 = inlined_call_operand.hbm [shape: f32[4,4,36], index: 2, kind: input, shape index: {}]   ;;  %s2321_s3 = inlined_call_operand.vmem [shape: f32[4,4,1], index: 3, kind: input, shape index: {}]   ;;  %s2322_s4 = inlined_call_operand.vmem [shape: f32[5,4], index: 4, kind: input, shape index: {}]   ;;  %s2323_s5 = inlined_call_operand.vmem [shape: f32[5,1], index: 5, kind: input, shape index: {}]   ;;  %s2324_s6 = inlined_call_operand.hbm [shape: f32[2,4,256], index: 6, kind: output, shape index: {0}]   ;;  %s2325_s7 = inlined_call_operand.vmem [shape: f32[2,5,256], index: 7, kind: output, shape index: {1}]  }
   0x1   :  { %14 = vsyncpa [#allocation4], 0 }
   0x2   :  { %16 = vsyncpa [#allocation4 + $0x1], 0  ;;  %s1677_s24 = smov 0   ;;  %s1679_s25 = smov 0  }
   0x3   :  { %s1681_s26 = smov 0   ;;  %s1683_s27 = smov 0  }
   0x4 LB: > { %s1698_s28 = sadd.s32 4294967295, %s1621_s27   ;;  %s1386_s29 = sadd.s32 4294967294, %s1621_s27   ;;  %s1621_s27 = sphi %s1683_s27, %s2344_s27   ;;  %s1617_s26 = sphi %s1681_s26, %s2343_s26   ;;  %s1613_s25 = sphi %s1679_s25, %s2342_s25   ;;  %s1609_s24 = sphi %s1677_s24, %s2341_s24  }
   0x5   : > { %s1702_s30 = sadd.s32 1, %s1621_s27   ;;  %s160_s8 = sadd.s32 1, %s1617_s26 }
   0x6   : > { %s157_s9 = ssub.s32 %s1621_s27, %s1702_s30  ;;  %p170_p0 = scmp.ne.s32.totalorder %s1617_s26, %s1613_s25 }
   0x7   : > { %p158_p1 = scmp.eq.s32.totalorder %s157_s9, 0  ;;  %p171_p2 = scmp.eq.s32.totalorder %s1698_s28, 1 }
   0x8   : > { %p176_p3 = scmp.ne.s32.totalorder %s1613_s25, %s1609_s24  ;;  %p177_p4 = scmp.eq.s32.totalorder %s1386_s29, 1 }
   0x9   : > { %s1713_s10 = scalar_select %p158_p1, %s1617_s26, %s160_s8  }
   0xa   : > { %p1715_p5 = por %p171_p2, %p170_p0  ;;  %p1719_p6 = por %p177_p4, %p176_p3 }
   0xb   : > { %p1387_p7 = scmp.ge.s32.totalorder %s1621_s27, 1  ;;  %p210_p8 = scmp.lt.s32.totalorder %s1621_s27, 3 }
   0xc   : > { %s2331_s11 = scalar_select %p1715_p5, 1, 0 }
   0xd   : > { %s2332_s12 = scalar_select %p1719_p6, 1, 0 }
   0xe   : > { %p2326_p9 = scmp.eq.s32.totalorder %s1698_s28, 0  ;;  %p1726_p10 = pnand %p1387_p7, %p210_p8 }
   0xf   : > { %s1623_s14 = smov [#allocation2]   ;;  %s1527_s19 = scalar_lea.hbm %s2320_s2, 256 }
  0x10   : > { %s2333_s13 = scalar_select %p1726_p10, 1, 0 }
  0x11   : > { %s225_s15 = sshll.u32 %s1623_s14, 4  ;;  %p1468_p11 = pneg %p1726_p10  ;;  %s226_s15 = int_to_ptr.vmem [resolvable:$true] %s225_s15 }
  0x12   : > { %p1528_p13 = scmp.ne.s32.totalorder %s2320_s2, %s1527_s19  ;;  %p1534_p3 = scmp.lt.u32.totalorder %s1527_s19, %s2320_s2 }
  0x13   : > { %p1734_p12 = pnand %p2326_p9, %p1468_p11 }
  0x15   : > { %p1529_p0 = pneg %p1734_p12 }
  0x17   : > { %p1530_p1 = pnand %p1529_p0, %p1528_p13 }
  0x19   : > { %p1531_p2 = pneg %p1530_p1 }
  0x1b   : > { %p1536_p4 = pnand %p1534_p3, %p1531_p2 }
  0x1d   : > { %1539 = shalt.err (!%p1536_p4)
}
  0x1e   : > { %s1540_s29 = scalar_lea.vmem %s226_s15, 256  ;;  %p1548_p9 = scmp.lt.s32.totalorder %s226_s15, %s226_s15 }
  0x1f   : > { %p1541_p7 = scmp.ne.s32.totalorder %s226_s15, %s1540_s29  ;;  %p1549_p6 = scmp.lt.s32.totalorder %s1540_s29, %s1540_s29 }
  0x21   : > { %p1543_p8 = pnand %p1541_p7, %p1529_p0  ;;  %p1550_p5 = por %p1549_p6, %p1548_p9 }
  0x23   : > { %p1544_p11 = pneg %p1543_p8 }
  0x25   : > { %p1551_p10 = pnand %p1550_p5, %p1544_p11 }
  0x27   : > { %1554 = shalt.err (!%p1551_p10)
}
  0x28   : > { %s1624_s8 = smov 64   ;;  %s1625_s9 = smov 4  }
  0x29   : > { %1471 = dma.hbm_to_vmem [thread:$0]  (!%p1734_p12), %s2320_s2, 256, %s226_s15, [#allocation3], %s1624_s8, %s1624_s8, %s1625_s9  }
  0x2a   : > { %p2335_p13 = scmp.ne.s32.totalorder %s2333_s13, 0 }
  0x2b   : > { %p2336_p1 = scmp.eq.s32.totalorder (!%p2335_p13), %s1698_s28, 0 }
  0x2c   : > { %258 = sbr.rel (%p2335_p13) target bundleno = 1756 (0x6dc), region = 44 }
  0x33   : > { %1600 = dma.done.wait (%p2336_p1), [#allocation3], 256   ;;  %p2337_p0 = pmov %p2336_p1 }
  0x34   : > { %p295_p5 = scmp.lt.s32.totalorder %s1698_s28, 1  ;;  %s1626_s13 = smov 1   ;;  %v1632_v2 = vmov 0.0   ;;  %v1634_v3 = vmov 0   ;;  %v307_v4 = vld [vmem:[%s2321_s3] sm:$0xf]  ;;  %v315_v5 = vlaneseq }
  0x35   : > { %1602 = vsyncadd (%p2337_p0), [#allocation3], 4294967040  ;;  %s1627_s21 = smov 16   ;;  %s1628_s22 = smov 17   ;;  %600 = vmatprep.mubr.f32.mxu0 %v1632_v2  ;;  %787 = vmatprep.mubr.f32.mxu1 %v1632_v2  ;;  %v1399_v12 = vld [vmem:[%s2319_s1 + $0x6] sm:$0x3] }
  0x36   : > { %s1762_s18 = scalar_select %p295_p5, %s1698_s28, 1  ;;  %1524 = vset.pattern.permute.xlu0 %v1634_v3  ;;  %1525 = vset.pattern.permute.xlu1 %v1634_v3  ;;  %v323_v6 = vshrl.u32 %v315_v5, 7  ;;  %v1811_v7 = vand.u32 127, %v315_v5  ;;  %v1397_v13 = vld [vmem:[%s2319_s1 + $0x2] sm:$0x3]  ;;  %vm512_vm5 = vcmask 1043456  }
  0x37   : > { %s1629_s23 = smov 15   ;;  %s1630_s29 = smov 127   ;;  %v320_v18 = vld [vmem:[%s2319_s1] sm:$0x3]  ;;  %v1398_v23 = vld [vmem:[%s2319_s1 + $0x4] sm:$0x3] }
  0x38   : > { %s1427_s16 = sshll.u32 %s1762_s18, 3  ;;  %s1631_s8 = smov 112   ;;  %v1813_v10 = vsub.s32 0, %v323_v6  ;;  %v1815_v11 = vsub.s32 1, %v323_v6  ;;  %vm382_vm0 = vcmp.lt.s32.totalorder %v1811_v7, 1  ;;  %vm338_vm1 = vcmp.lt.s32.totalorder %v1811_v7, 16 }
  0x39   : > { %s299_s15 = scalar_lea.vmem %s2318_s0, %s1427_s16  ;;  %s1633_s9 = smov 113   ;;  %vm317_vm2 = vcmp.lt.s32.totalorder %v1811_v7, 17  ;;  %vm360_vm3 = vcmp.lt.s32.totalorder %v1811_v7, 15  ;;  %vm404_vm4 = vcmp.lt.s32.totalorder %v1811_v7, 127  ;;  %v1400_v42 = vld [vmem:[%s2319_s1 + $0xa] sm:$0x3] }
  0x3a   : > { %v1768_v0 = vld [vmem:[%s299_s15] sm:$0xff]  ;;  %s2329_s14 = smov 111   ;;  %v1825_v16 = vrot.slane %v1399_v12, %v1813_v10  ;;  %v1828_v17 = vrot.slane %v1399_v12, %v1815_v11  ;;  %v1839_v21 = vrot.slane %v1397_v13, %v1813_v10  ;;  %v1842_v22 = vrot.slane %v1397_v13, %v1815_v11  ;;  %v1402_v53 = vld [vmem:[%s2319_s1 + $0xe] sm:$0x3]  ;;  %v1401_v5 = vld [vmem:[%s2319_s1 + $0xc] sm:$0x3] }
  0x3b   : > { %378 = vrot.lane.b32.xlu1 %v1768_v0, %s1626_s13  ;;  %334 = vrot.lane.b32.xlu0 %v1768_v0, %s1627_s21  ;;  %v1776_v1 = vcombine.high %v1768_v0, %v1768_v0  ;;  %v1849_v24 = vrot.slane %v320_v18, %v1813_v10  ;;  %v1852_v25 = vrot.slane %v320_v18, %v1815_v11  ;;  %vm448_vm6 = vcmp.lt.s32.totalorder %v1811_v7, 112  ;;  %s2338_s17 = smov 111   ;;  %s1429_s16 = sshll.u32 %s1698_s28, 7 }
  0x3c   : > { %v1864_v34 = vrot.slane %v1398_v23, %v1813_v10  ;;  %v1867_v35 = vrot.slane %v1398_v23, %v1815_v11  ;;  %v1886_v51 = vrot.slane %v1400_v42, %v1813_v10  ;;  %v1889_v52 = vrot.slane %v1400_v42, %v1815_v11  ;;  %v1403_v23 = vld [vmem:[%s2319_s1 + $0x10] sm:$0x3]  ;;  %p2339_p9 = scmp.ne.s32.totalorder %s2331_s11, 0 }
  0x3d   : > { %v1904_v3 = vrot.slane %v1402_v53, %v1813_v10  ;;  %vm426_vm7 = vcmp.lt.s32.totalorder %v1811_v7, 113  ;;  %vm470_vm8 = vcmp.lt.s32.totalorder %v1811_v7, 111  ;;  %vm526_vm9 = vcmask 293888  }
  0x3e   : > { %vm1186_vm10 = vcmask 31744  }
  0x3f   : > { %311 = vrot.lane.b32.xlu0 %v1768_v0, %s1628_s22  ;;  %380 = vrot.lane.b32.xlu1 %v1776_v1, %s1626_s13 }
  0x43   : > { %313 = vrot.lane.b32.xlu1 %v1776_v1, %s1628_s22  ;;  %336 = vrot.lane.b32.xlu0 %v1776_v1, %s1627_s21 }
  0x47   : > { %358 = vrot.lane.b32.xlu1 %v1776_v1, %s1629_s23  ;;  %356 = vrot.lane.b32.xlu0 %v1768_v0, %s1629_s23 }
  0x4b   : > { %402 = vrot.lane.b32.xlu1 %v1776_v1, %s1630_s29  ;;  %400 = vrot.lane.b32.xlu0 %v1768_v0, %s1630_s29 }
  0x4f   : > { %446 = vrot.lane.b32.xlu1 %v1776_v1, %s1631_s8  ;;  %444 = vrot.lane.b32.xlu0 %v1768_v0, %s1631_s8 }
  0x53   : > { %424 = vrot.lane.b32.xlu1 %v1776_v1, %s1633_s9  ;;  %422 = vrot.lane.b32.xlu0 %v1768_v0, %s1633_s9 }
  0x57   : > { %468 = vrot.lane.b32.xlu1 %v1776_v1, %s2329_s14  ;;  %466 = vrot.lane.b32.xlu0 %v1768_v0, %s2329_s14 }
  0x5b   : > { %523 = vperm.xlu0 %1524, %v307_v4   ;;  %v1907_v4 = vrot.slane %v1402_v53, %v1815_v11 }
  0xad   : > { %v379_v8 = vpop.permute.xlu1 %378  ;;  %v335_v9 = vpop.permute.xlu0 %334 }
  0xb1   : > { %v312_v14 = vpop.permute.xlu0 %311  ;;  %v381_v15 = vpop.permute.xlu1 %380 }
  0xb2   : > { %v383_v19 = vsel %vm382_vm0, %v379_v8, %v381_v15  ;;  %v384_v20 = vsel %vm382_vm0, %v381_v15, %v379_v8 }
  0xb3   : > { %v398_v28 = vmul.f32 %v1825_v16, %v384_v20  ;;  %v399_v29 = vmul.f32 %v1828_v17, %v383_v19  ;;  %v1922_v19 = vrot.slane %v1401_v5, %v1813_v10  ;;  %v1925_v20 = vrot.slane %v1401_v5, %v1815_v11 }
  0xb5   : > { %v314_v26 = vpop.permute.xlu1 %313  ;;  %v337_v27 = vpop.permute.xlu0 %336  ;;  %v496_v43 = vrot.slane %v398_v28, 4  ;;  %v497_v44 = vrot.slane %v399_v29, 4 }
  0xb6   : > { %v339_v30 = vsel %vm338_vm1, %v335_v9, %v337_v27  ;;  %v340_v31 = vsel %vm338_vm1, %v337_v27, %v335_v9  ;;  %v318_v36 = vsel %vm317_vm2, %v312_v14, %v314_v26  ;;  %v319_v37 = vsel %vm317_vm2, %v314_v26, %v312_v14 }
  0xb7   : > { %v354_v32 = vmul.f32 %v1839_v21, %v340_v31  ;;  %v355_v33 = vmul.f32 %v1842_v22, %v339_v30  ;;  %v332_v47 = vmul.f32 %v1849_v24, %v319_v37  ;;  %v333_v48 = vmul.f32 %v1852_v25, %v318_v36 }
  0xb9   : > { %v490_v38 = vrot.slane %v354_v32, 4  ;;  %v491_v39 = vrot.slane %v355_v33, 4  ;;  %v359_v40 = vpop.permute.xlu1 %358  ;;  %v357_v41 = vpop.permute.xlu0 %356  ;;  %v1936_v32 = vrot.slane %v1403_v23, %v1815_v11 }
  0xba   : > { %v361_v45 = vsel %vm360_vm3, %v357_v41, %v359_v40  ;;  %v362_v46 = vsel %vm360_vm3, %v359_v40, %v357_v41 }
  0xbb   : > { %v376_v49 = vmul.f32 %v1864_v34, %v362_v46  ;;  %v377_v50 = vmul.f32 %v1867_v35, %v361_v45  ;;  %v514_v56 = vsel %vm512_vm5, %v333_v48, %v491_v39  ;;  %v513_v58 = vsel %vm512_vm5, %v332_v47, %v490_v38 }
  0xbc   : > { %v1941_v39 = vrot.slane %v1403_v23, %v1813_v10 }
  0xbd   : > { %v403_v54 = vpop.permute.xlu1 %402  ;;  %v401_v55 = vpop.permute.xlu0 %400  ;;  %v516_v57 = vsel %vm512_vm5, %v377_v50, %v497_v44  ;;  %v515_v59 = vsel %vm512_vm5, %v376_v49, %v496_v43  ;;  %v306_v50 = vld [vmem:[#allocation2] sm:$0xf] }
  0xbe   : > { %v405_v60 = vsel %vm404_vm4, %v401_v55, %v403_v54  ;;  %v406_v61 = vsel %vm404_vm4, %v403_v54, %v401_v55  ;;  %v1430_v62 = vpack.c.bf16 %v516_v57, %v514_v56  ;;  %v1432_v63 = vpack.c.bf16 %v515_v59, %v513_v58 }
  0xbf   : > { %v420_v6 = vmul.f32 %v1886_v51, %v405_v60  ;;  %v421_v8 = vmul.f32 %v1889_v52, %v406_v61  ;;  %v1407_v60 = vld [vmem:[%s2321_s3 + $0x4] sm:$0xf] }
  0xc0   : > { %1431 = vmatprep.subr.bf16.mxu0 %v1430_v62 }
  0xc1   : > { %v447_v9 = vpop.permute.xlu1 %446  ;;  %1433 = vmatpush1.bf16.msra.mxu0 %v1432_v63  ;;  %v445_v12 = vpop.permute.xlu0 %444  ;;  %v502_v26 = vrot.slane %v420_v6, 4  ;;  %v503_v27 = vrot.slane %v421_v8, 4 }
  0xc2   : > { %v449_v13 = vsel %vm448_vm6, %v445_v12, %v447_v9  ;;  %v450_v14 = vsel %vm448_vm6, %v447_v9, %v445_v12 }
  0xc3   : > { %v464_v15 = vmul.f32 %v1904_v3, %v449_v13  ;;  %v465_v18 = vmul.f32 %v1907_v4, %v450_v14  ;;  %v518_v41 = vsel %vm512_vm5, %v1776_v1, %v503_v27  ;;  %v517_v11 = vsel %vm512_vm5, %v1768_v0, %v502_v26 }
  0xc5   : > { %v425_v28 = vpop.permute.xlu1 %424  ;;  %v423_v29 = vpop.permute.xlu0 %422  ;;  %v508_v33 = vrot.slane %v464_v15, 4  ;;  %v509_v36 = vrot.slane %v465_v18, 4 }
  0xc6   : > { %v427_v30 = vsel %vm426_vm7, %v423_v29, %v425_v28  ;;  %v428_v31 = vsel %vm426_vm7, %v425_v28, %v423_v29 }
  0xc7   : > { %v442_v37 = vmul.f32 %v1922_v19, %v427_v30  ;;  %v443_v38 = vmul.f32 %v1925_v20, %v428_v31 }
  0xc9   : > { %v469_v40 = vpop.permute.xlu1 %468  ;;  %v520_v42 = vsel %vm512_vm5, %v443_v38, %v509_v36  ;;  %v467_v43 = vpop.permute.xlu0 %466  ;;  %v519_v44 = vsel %vm512_vm5, %v442_v37, %v508_v33 }
  0xca   : > { %v1434_v45 = vpack.c.bf16 %v520_v42, %v518_v41  ;;  %v471_v46 = vsel %vm470_vm8, %v467_v43, %v469_v40  ;;  %v472_v10 = vsel %vm470_vm8, %v469_v40, %v467_v43  ;;  %v1436_v47 = vpack.c.bf16 %v519_v44, %v517_v11 }
  0xcb   : > { %v487_v48 = vmul.f32 %v1936_v32, %v472_v10  ;;  %v486_v49 = vmul.f32 %v1941_v39, %v471_v46 }
  0xcc   : > { %1435 = vmatprep.subr.bf16.mxu0 %v1434_v45 }
  0xcd   : > { %1437 = vmatpush1.bf16.msra.mxu0 %v1436_v47 }
  0xce   : > { %1404 = vmatprep.subr.msk.mxu0 %vm512_vm5, %v487_v48 }
  0xd1   : > { %1405 = vmatpush1.msk.msra.mxu0 %vm512_vm5, %v486_v49 }
  0xd2   : > { %1406 = vmatmul.mubr.msk.f32.vlgmr.msra.gmra.mrb[0].mxu0 %vm526_vm9, %v306_v50 }
  0xd3   : > { %976 = vmatprep.mubr.f32.mxu0 %v1632_v2 }
  0xda   : > { %v524_v53 = vpop.permute.xlu0 %523 }
 0x1a5   : > { %v602_v54 = vpop.f32.mrb[0].mxu0 }
 0x1a6   : > { %v603_v55 = vadd.f32 %v602_v54, %v524_v53  ;;  %v604_v56 = vpop.f32.mrb[1].mxu0 }
 0x1a7   : > { %v605_v58 = vadd.f32 %v604_v56, %v524_v53 }
 0x1a8   : > { %v1959_v57 = vmax.f32 %v603_v55, 0.0 }
 0x1a9   : > { %v1965_v59 = vmax.f32 %v605_v58, 0.0 }
 0x1aa   : > { %637 = vrot.lane.b32.xlu0 %v1959_v57, %s1626_s13  ;;  %621 = vrot.lane.b32.xlu1 %v1959_v57, %s1627_s21 }
 0x1ae   : > { %613 = vrot.lane.b32.xlu0 %v1959_v57, %s1628_s22  ;;  %623 = vrot.lane.b32.xlu1 %v1965_v59, %s1627_s21 }
 0x1b2   : > { %629 = vrot.lane.b32.xlu0 %v1959_v57, %s1629_s23  ;;  %639 = vrot.lane.b32.xlu1 %v1965_v59, %s1626_s13 }
 0x1b6   : > { %645 = vrot.lane.b32.xlu0 %v1959_v57, %s1630_s29  ;;  %615 = vrot.lane.b32.xlu1 %v1965_v59, %s1628_s22 }
 0x1ba   : > { %661 = vrot.lane.b32.xlu0 %v1959_v57, %s1631_s8  ;;  %631 = vrot.lane.b32.xlu1 %v1965_v59, %s1629_s23 }
 0x1be   : > { %653 = vrot.lane.b32.xlu0 %v1959_v57, %s1633_s9  ;;  %647 = vrot.lane.b32.xlu1 %v1965_v59, %s1630_s29 }
 0x1c2   : > { %669 = vrot.lane.b32.xlu0 %v1959_v57, %s2338_s17  ;;  %663 = vrot.lane.b32.xlu1 %v1965_v59, %s1631_s8 }
 0x1c6   : > { %711 = vperm.xlu0 %1524, %v1407_v60   ;;  %655 = vrot.lane.b32.xlu1 %v1965_v59, %s1633_s9 }
 0x1ca   : > { %671 = vrot.lane.b32.xlu1 %v1965_v59, %s2338_s17 }
 0x21c   : > { %v638_v61 = vpop.permute.xlu0 %637  ;;  %v622_v62 = vpop.permute.xlu1 %621 }
 0x220   : > { %v614_v63 = vpop.permute.xlu0 %613  ;;  %v624_v5 = vpop.permute.xlu1 %623 }
 0x221   : > { %v625_v9 = vsel %vm338_vm1, %v622_v62, %v624_v5  ;;  %v626_v12 = vsel %vm338_vm1, %v624_v5, %v622_v62 }
 0x222   : > { %v627_v18 = vmul.f32 %v626_v12, %v1839_v21  ;;  %v628_v23 = vmul.f32 %v625_v9, %v1842_v22 }
 0x224   : > { %v630_v6 = vpop.permute.xlu0 %629  ;;  %v640_v8 = vpop.permute.xlu1 %639  ;;  %v679_v37 = vrot.slane %v627_v18, 4  ;;  %v680_v38 = vrot.slane %v628_v23, 4 }
 0x225   : > { %v641_v13 = vsel %vm382_vm0, %v638_v61, %v640_v8  ;;  %v642_v14 = vsel %vm382_vm0, %v640_v8, %v638_v61 }
 0x226   : > { %v643_v28 = vmul.f32 %v642_v14, %v1825_v16  ;;  %v644_v29 = vmul.f32 %v641_v13, %v1828_v17 }
 0x228   : > { %v616_v15 = vpop.permute.xlu1 %615  ;;  %v646_v30 = vpop.permute.xlu0 %645  ;;  %v685_v42 = vrot.slane %v643_v28, 4  ;;  %v686_v43 = vrot.slane %v644_v29, 4 }
 0x229   : > { %v617_v26 = vsel %vm317_vm2, %v614_v63, %v616_v15  ;;  %v618_v27 = vsel %vm317_vm2, %v616_v15, %v614_v63 }
 0x22a   : > { %v619_v31 = vmul.f32 %v618_v27, %v1849_v24  ;;  %v620_v33 = vmul.f32 %v617_v26, %v1852_v25 }
 0x22c   : > { %v632_v36 = vpop.permute.xlu1 %631  ;;  %v662_v45 = vpop.permute.xlu0 %661  ;;  %v702_v10 = vsel %vm512_vm5, %v620_v33, %v680_v38  ;;  %v701_v48 = vsel %vm512_vm5, %v619_v31, %v679_v37 }
 0x22d   : > { %v633_v40 = vsel %vm360_vm3, %v630_v6, %v632_v36  ;;  %v634_v41 = vsel %vm360_vm3, %v632_v36, %v630_v6 }
 0x22e   : > { %v635_v11 = vmul.f32 %v634_v41, %v1864_v34  ;;  %v636_v44 = vmul.f32 %v633_v40, %v1867_v35 }
 0x230   : > { %v648_v46 = vpop.permute.xlu1 %647  ;;  %v704_v47 = vsel %vm512_vm5, %v636_v44, %v686_v43  ;;  %v703_v49 = vsel %vm512_vm5, %v635_v11, %v685_v42  ;;  %v654_v63 = vpop.permute.xlu0 %653  ;;  %v610_v42 = vld [vmem:[#allocation2 + $0x4] sm:$0xf] }
 0x231   : > { %v649_v50 = vsel %vm404_vm4, %v646_v30, %v648_v46  ;;  %v650_v53 = vsel %vm404_vm4, %v648_v46, %v646_v30  ;;  %v1438_v54 = vpack.c.bf16 %v704_v47, %v702_v10  ;;  %v1440_v55 = vpack.c.bf16 %v703_v49, %v701_v48 }
 0x232   : > { %v651_v56 = vmul.f32 %v649_v50, %v1886_v51  ;;  %v652_v58 = vmul.f32 %v650_v53, %v1889_v52 }
 0x233   : > { %1439 = vmatprep.subr.bf16.mxu1 %v1438_v54 }
 0x234   : > { %1441 = vmatpush1.bf16.msra.mxu1 %v1440_v55  ;;  %v664_v60 = vpop.permute.xlu1 %663  ;;  %v691_v8 = vrot.slane %v651_v56, 4  ;;  %v692_v9 = vrot.slane %v652_v58, 4  ;;  %v670_v27 = vpop.permute.xlu0 %669 }
 0x235   : > { %v665_v61 = vsel %vm448_vm6, %v662_v45, %v664_v60  ;;  %v666_v62 = vsel %vm448_vm6, %v664_v60, %v662_v45 }
 0x236   : > { %v667_v5 = vmul.f32 %v665_v61, %v1904_v3  ;;  %v668_v6 = vmul.f32 %v666_v62, %v1907_v4  ;;  %v706_v29 = vsel %vm512_vm5, %v1965_v59, %v692_v9  ;;  %v705_v31 = vsel %vm512_vm5, %v1959_v57, %v691_v8 }
 0x238   : > { %v656_v12 = vpop.permute.xlu1 %655  ;;  %v697_v15 = vrot.slane %v667_v5, 4  ;;  %v698_v18 = vrot.slane %v668_v6, 4 }
 0x239   : > { %v657_v13 = vsel %vm426_vm7, %v654_v63, %v656_v12  ;;  %v658_v14 = vsel %vm426_vm7, %v656_v12, %v654_v63 }
 0x23a   : > { %v659_v23 = vmul.f32 %v657_v13, %v1922_v19  ;;  %v660_v26 = vmul.f32 %v658_v14, %v1925_v20 }
 0x23c   : > { %v672_v28 = vpop.permute.xlu1 %671  ;;  %v708_v30 = vsel %vm512_vm5, %v660_v26, %v698_v18  ;;  %v707_v33 = vsel %vm512_vm5, %v659_v23, %v697_v15 }
 0x23d   : > { %v674_v36 = vsel %vm470_vm8, %v672_v28, %v670_v27  ;;  %v1442_v37 = vpack.c.bf16 %v708_v30, %v706_v29  ;;  %v1444_v38 = vpack.c.bf16 %v707_v33, %v705_v31  ;;  %v673_v41 = vsel %vm470_vm8, %v670_v27, %v672_v28 }
 0x23e   : > { %v676_v40 = vmul.f32 %v674_v36, %v1936_v32  ;;  %v675_v59 = vmul.f32 %v673_v41, %v1941_v39 }
 0x23f   : > { %1443 = vmatprep.subr.bf16.mxu1 %v1442_v37 }
 0x240   : > { %1445 = vmatpush1.bf16.msra.mxu1 %v1444_v38 }
 0x241   : > { %1408 = vmatprep.subr.msk.mxu1 %vm512_vm5, %v676_v40 }
 0x244   : > { %1409 = vmatpush1.msk.msra.mxu1 %vm512_vm5, %v675_v59 }
 0x245   : > { %1410 = vmatmul.mubr.msk.f32.vlgmr.msra.gmra.mrb[0].mxu1 %vm526_vm9, %v610_v42  ;;  %v712_v57 = vpop.permute.xlu0 %711 }
 0x246   : > { %1163 = vmatprep.mubr.f32.mxu1 %v1632_v2 }
 0x318   : > { %v789_v43 = vpop.f32.mrb[0].mxu1 }
 0x319   : > { %v790_v11 = vadd.f32 %v789_v43, %v712_v57  ;;  %v791_v44 = vpop.f32.mrb[1].mxu1 }
 0x31a   : > { %v792_v45 = vadd.f32 %v791_v44, %v712_v57 }
 0x31b   : > { %v794_v46 = vadd.f32 %v790_v11, %v1768_v0  ;;  %v1411_v0 = vld [vmem:[%s2321_s3 + $0x8] sm:$0xf] }
 0x31c   : > { %v795_v10 = vadd.f32 %v792_v45, %v1776_v1 }
 0x31d   : > { %v2062_v47 = vmax.f32 %v794_v46, 0.0 }
 0x31e   : > { %v2064_v48 = vmax.f32 %v795_v10, 0.0 }
 0x31f   : > { %810 = vrot.lane.b32.xlu1 %v2062_v47, %s1627_s21 }
 0x320   : > { %812 = vrot.lane.b32.xlu0 %v2064_v48, %s1627_s21 }
 0x323   : > { %826 = vrot.lane.b32.xlu1 %v2062_v47, %s1626_s13 }
 0x324   : > { %828 = vrot.lane.b32.xlu0 %v2064_v48, %s1626_s13 }
 0x327   : > { %802 = vrot.lane.b32.xlu1 %v2062_v47, %s1628_s22 }
 0x328   : > { %804 = vrot.lane.b32.xlu0 %v2064_v48, %s1628_s22 }
 0x32b   : > { %818 = vrot.lane.b32.xlu1 %v2062_v47, %s1629_s23 }
 0x32c   : > { %820 = vrot.lane.b32.xlu0 %v2064_v48, %s1629_s23 }
 0x32f   : > { %834 = vrot.lane.b32.xlu1 %v2062_v47, %s1630_s29 }
 0x330   : > { %836 = vrot.lane.b32.xlu0 %v2064_v48, %s1630_s29 }
 0x333   : > { %850 = vrot.lane.b32.xlu1 %v2062_v47, %s1631_s8 }
 0x334   : > { %852 = vrot.lane.b32.xlu0 %v2064_v48, %s1631_s8 }
 0x337   : > { %842 = vrot.lane.b32.xlu1 %v2062_v47, %s1633_s9 }
 0x338   : > { %844 = vrot.lane.b32.xlu0 %v2064_v48, %s1633_s9 }
 0x33b   : > { %858 = vrot.lane.b32.xlu1 %v2062_v47, %s2338_s17 }
 0x33c   : > { %860 = vrot.lane.b32.xlu0 %v2064_v48, %s2338_s17 }
 0x33f   : > { %900 = vperm.xlu1 %1525, %v1411_v0  }
 0x391   : > { %v811_v1 = vpop.permute.xlu1 %810 }
 0x392   : > { %v813_v49 = vpop.permute.xlu0 %812 }
 0x393   : > { %v814_v54 = vsel %vm338_vm1, %v811_v1, %v813_v49  ;;  %v815_v55 = vsel %vm338_vm1, %v813_v49, %v811_v1 }
 0x394   : > { %v816_v62 = vmul.f32 %v815_v55, %v1839_v21  ;;  %v817_v63 = vmul.f32 %v814_v54, %v1842_v22 }
 0x395   : > { %v827_v50 = vpop.permute.xlu1 %826 }
 0x396   : > { %v829_v53 = vpop.permute.xlu0 %828  ;;  %v868_v18 = vrot.slane %v816_v62, 4  ;;  %v869_v23 = vrot.slane %v817_v63, 4 }
 0x397   : > { %v830_v56 = vsel %vm382_vm0, %v827_v50, %v829_v53  ;;  %v831_v58 = vsel %vm382_vm0, %v829_v53, %v827_v50 }
 0x398   : > { %v832_v8 = vmul.f32 %v831_v58, %v1825_v16  ;;  %v833_v9 = vmul.f32 %v830_v56, %v1828_v17 }
 0x399   : > { %v803_v60 = vpop.permute.xlu1 %802 }
 0x39a   : > { %v805_v61 = vpop.permute.xlu0 %804  ;;  %v874_v28 = vrot.slane %v832_v8, 4  ;;  %v875_v29 = vrot.slane %v833_v9, 4 }
 0x39b   : > { %v806_v5 = vsel %vm317_vm2, %v803_v60, %v805_v61  ;;  %v807_v6 = vsel %vm317_vm2, %v805_v61, %v803_v60 }
 0x39c   : > { %v808_v13 = vmul.f32 %v807_v6, %v1849_v24  ;;  %v809_v14 = vmul.f32 %v806_v5, %v1852_v25 }
 0x39d   : > { %v819_v12 = vpop.permute.xlu1 %818 }
 0x39e   : > { %v821_v15 = vpop.permute.xlu0 %820  ;;  %v890_v36 = vsel %vm512_vm5, %v808_v13, %v868_v18  ;;  %v891_v40 = vsel %vm512_vm5, %v809_v14, %v869_v23 }
 0x39f   : > { %v822_v26 = vsel %vm360_vm3, %v819_v12, %v821_v15  ;;  %v823_v27 = vsel %vm360_vm3, %v821_v15, %v819_v12 }
 0x3a0   : > { %v824_v30 = vmul.f32 %v823_v27, %v1864_v34  ;;  %v825_v31 = vmul.f32 %v822_v26, %v1867_v35 }
 0x3a1   : > { %v835_v33 = vpop.permute.xlu1 %834 }
 0x3a2   : > { %v892_v37 = vsel %vm512_vm5, %v824_v30, %v874_v28  ;;  %v837_v38 = vpop.permute.xlu0 %836  ;;  %v893_v41 = vsel %vm512_vm5, %v825_v31, %v875_v29  ;;  %v799_v28 = vld [vmem:[#allocation2 + $0x8] sm:$0xf] }
 0x3a3   : > { %v838_v59 = vsel %vm404_vm4, %v835_v33, %v837_v38  ;;  %v839_v42 = vsel %vm404_vm4, %v837_v38, %v835_v33  ;;  %v1446_v57 = vpack.c.bf16 %v893_v41, %v891_v40  ;;  %v1448_v43 = vpack.c.bf16 %v892_v37, %v890_v36  ;;  %v1180_v40 = vld [vmem:[%s2323_s5] sm:$0x1f] }
 0x3a4   : > { %v840_v44 = vmul.f32 %v838_v59, %v1886_v51  ;;  %v841_v45 = vmul.f32 %v839_v42, %v1889_v52 }
 0x3a5   : > { %1447 = vmatprep.subr.bf16.mxu0 %v1446_v57  ;;  %v851_v11 = vpop.permute.xlu1 %850 }
 0x3a6   : > { %v853_v46 = vpop.permute.xlu0 %852  ;;  %1449 = vmatpush1.bf16.msra.mxu0 %v1448_v43  ;;  %v880_v53 = vrot.slane %v840_v44, 4  ;;  %v881_v54 = vrot.slane %v841_v45, 4 }
 0x3a7   : > { %v854_v10 = vsel %vm448_vm6, %v851_v11, %v853_v46  ;;  %v855_v0 = vsel %vm448_vm6, %v853_v46, %v851_v11 }
 0x3a8   : > { %v856_v1 = vmul.f32 %v854_v10, %v1904_v3  ;;  %v857_v49 = vmul.f32 %v855_v0, %v1907_v4  ;;  %v894_v6 = vsel %vm512_vm5, %v2062_v47, %v880_v53  ;;  %v895_v12 = vsel %vm512_vm5, %v2064_v48, %v881_v54 }
 0x3a9   : > { %v843_v50 = vpop.permute.xlu1 %842 }
 0x3aa   : > { %v845_v55 = vpop.permute.xlu0 %844  ;;  %v886_v60 = vrot.slane %v856_v1, 4  ;;  %v887_v61 = vrot.slane %v857_v49, 4 }
 0x3ab   : > { %v846_v56 = vsel %vm426_vm7, %v843_v50, %v845_v55  ;;  %v847_v58 = vsel %vm426_vm7, %v845_v55, %v843_v50 }
 0x3ac   : > { %v848_v62 = vmul.f32 %v846_v56, %v1922_v19  ;;  %v849_v63 = vmul.f32 %v847_v58, %v1925_v20 }
 0x3ad   : > { %v859_v5 = vpop.permute.xlu1 %858 }
 0x3ae   : > { %v896_v8 = vsel %vm512_vm5, %v848_v62, %v886_v60  ;;  %v861_v9 = vpop.permute.xlu0 %860  ;;  %v897_v13 = vsel %vm512_vm5, %v849_v63, %v887_v61 }
 0x3af   : > { %v863_v14 = vsel %vm470_vm8, %v861_v9, %v859_v5  ;;  %v1450_v15 = vpack.c.bf16 %v897_v13, %v895_v12  ;;  %v1452_v18 = vpack.c.bf16 %v896_v8, %v894_v6  ;;  %v862_v26 = vsel %vm470_vm8, %v859_v5, %v861_v9 }
 0x3b0   : > { %v865_v23 = vmul.f32 %v863_v14, %v1936_v32  ;;  %v864_v27 = vmul.f32 %v862_v26, %v1941_v39 }
 0x3b1   : > { %1451 = vmatprep.subr.bf16.mxu0 %v1450_v15 }
 0x3b2   : > { %1453 = vmatpush1.bf16.msra.mxu0 %v1452_v18 }
 0x3b3   : > { %1412 = vmatprep.subr.msk.mxu0 %vm512_vm5, %v865_v23 }
 0x3b6   : > { %1413 = vmatpush1.msk.msra.mxu0 %vm512_vm5, %v864_v27 }
 0x3b7   : > { %1414 = vmatmul.mubr.msk.f32.vlgmr.msra.gmra.mrb[2].mxu0 %vm526_vm9, %v799_v28 }
 0x3b8   : > { %1258 = vmatprep.mubr.f32.mxu0 %v1632_v2  ;;  %v1415_v2 = vld [vmem:[%s2321_s3 + $0xc] sm:$0xf] }
 0x3be   : > { %v901_v29 = vpop.permute.xlu1 %900 }
 0x48a   : > { %v978_v30 = vpop.f32.mrb[2].mxu0 }
 0x48b   : > { %v979_v31 = vadd.f32 %v978_v30, %v901_v29  ;;  %v980_v33 = vpop.f32.mrb[3].mxu0 }
 0x48c   : > { %v981_v36 = vadd.f32 %v980_v33, %v901_v29 }
 0x48d   : > { %v2163_v37 = vmax.f32 %v979_v31, 0.0 }
 0x48e   : > { %v2165_v38 = vmax.f32 %v981_v36, 0.0 }
 0x48f   : > { %997 = vrot.lane.b32.xlu0 %v2163_v37, %s1627_s21 }
 0x490   : > { %999 = vrot.lane.b32.xlu1 %v2165_v38, %s1627_s21 }
 0x493   : > { %1013 = vrot.lane.b32.xlu0 %v2163_v37, %s1626_s13 }
 0x494   : > { %1015 = vrot.lane.b32.xlu1 %v2165_v38, %s1626_s13  ;;  %s2278_s13 = scalar_lea.hbm %s2324_s6, %s1429_s16 }
 0x497   : > { %989 = vrot.lane.b32.xlu0 %v2163_v37, %s1628_s22 }
 0x498   : > { %991 = vrot.lane.b32.xlu1 %v2165_v38, %s1628_s22 }
 0x49b   : > { %1005 = vrot.lane.b32.xlu0 %v2163_v37, %s1629_s23 }
 0x49c   : > { %1007 = vrot.lane.b32.xlu1 %v2165_v38, %s1629_s23  ;;  %s1636_s23 = smov [#allocation5]  }
 0x49f   : > { %1021 = vrot.lane.b32.xlu0 %v2163_v37, %s1630_s29 }
 0x4a0   : > { %1023 = vrot.lane.b32.xlu1 %v2165_v38, %s1630_s29  ;;  %s285_s29 = sand.u32 1, %s1613_s25  }
 0x4a1   : > { %s1268_s21 = scalar_lea.sflag [#allocation4], %s285_s29 }
 0x4a3   : > { %1037 = vrot.lane.b32.xlu0 %v2163_v37, %s1631_s8 }
 0x4a4   : > { %1039 = vrot.lane.b32.xlu1 %v2165_v38, %s1631_s8  ;;  %s1392_s8 = sshll.u32 %s285_s29, 3 }
 0x4a7   : > { %1029 = vrot.lane.b32.xlu0 %v2163_v37, %s1633_s9 }
 0x4a8   : > { %1031 = vrot.lane.b32.xlu1 %v2165_v38, %s1633_s9  ;;  %s1559_s9 = sshll.u32 %s1636_s23, 4  ;;  %s1560_s9 = int_to_ptr.vmem [resolvable:$false] %s1559_s9 }
 0x4a9   : > { %s1561_s15 = scalar_lea.vmem %s1560_s9, 256 }
 0x4ab   : > { %1045 = vrot.lane.b32.xlu0 %v2163_v37, %s2338_s17 }
 0x4ac   : > { %1047 = vrot.lane.b32.xlu1 %v2165_v38, %s2338_s17  ;;  %s287_s17 = scalar_lea.vmem [#allocation5], %s1392_s8 }
 0x4ad   : > { %s1287_s19 = sshll.u32 %s287_s17, 4  ;;  %s1288_s19 = int_to_ptr.vmem [resolvable:$true] %s1287_s19 }
 0x4ae   : > { %s1555_s22 = scalar_lea.vmem %s1288_s19, 128  ;;  %p1562_p2 = scmp.lt.s32.totalorder %s1288_s19, %s1560_s9 }
 0x4af   : > { %1087 = vperm.xlu0 %1524, %v1415_v2   ;;  %p1556_p6 = scmp.ne.s32.totalorder %s1288_s19, %s1555_s22  ;;  %p1563_p3 = scmp.lt.s32.totalorder %s1561_s15, %s1555_s22 }
 0x4b0   : > { %1183 = vperm.xlu1 %1525, %v1180_v40  }
 0x4b1   : > { %p1557_p10 = pnand %p1556_p6, %p2339_p9  ;;  %p1564_p4 = por %p1563_p3, %p1562_p2 }
 0x4b3   : > { %p1558_p12 = pneg %p1557_p10 }
 0x4b5   : > { %p1565_p7 = pnand %p1564_p4, %p1558_p12 }
 0x501   : > { %v998_v41 = vpop.permute.xlu0 %997 }
 0x502   : > { %v1000_v59 = vpop.permute.xlu1 %999 }
 0x503   : > { %v1001_v43 = vsel %vm338_vm1, %v998_v41, %v1000_v59  ;;  %v1002_v11 = vsel %vm338_vm1, %v1000_v59, %v998_v41 }
 0x504   : > { %v1003_v0 = vmul.f32 %v1002_v11, %v1839_v21  ;;  %v1004_v1 = vmul.f32 %v1001_v43, %v1842_v22 }
 0x505   : > { %v1014_v42 = vpop.permute.xlu0 %1013 }
 0x506   : > { %v1016_v57 = vpop.permute.xlu1 %1015  ;;  %v1055_v61 = vrot.slane %v1003_v0, 4  ;;  %v1056_v21 = vrot.slane %v1004_v1, 4 }
 0x507   : > { %v1017_v44 = vsel %vm382_vm0, %v1014_v42, %v1016_v57  ;;  %v1018_v45 = vsel %vm382_vm0, %v1016_v57, %v1014_v42 }
 0x508   : > { %v1019_v53 = vmul.f32 %v1018_v45, %v1825_v16  ;;  %v1020_v54 = vmul.f32 %v1017_v44, %v1828_v17 }
 0x509   : > { %v990_v46 = vpop.permute.xlu0 %989 }
 0x50a   : > { %v992_v10 = vpop.permute.xlu1 %991  ;;  %v1061_v63 = vrot.slane %v1019_v53, 4  ;;  %v1062_v5 = vrot.slane %v1020_v54, 4 }
 0x50b   : > { %v993_v49 = vsel %vm317_vm2, %v990_v46, %v992_v10  ;;  %v994_v50 = vsel %vm317_vm2, %v992_v10, %v990_v46 }
 0x50c   : > { %v995_v56 = vmul.f32 %v994_v50, %v1849_v24  ;;  %v996_v58 = vmul.f32 %v993_v49, %v1852_v25 }
 0x50d   : > { %v1006_v55 = vpop.permute.xlu0 %1005 }
 0x50e   : > { %v1008_v60 = vpop.permute.xlu1 %1007  ;;  %v1077_v24 = vsel %vm512_vm5, %v995_v56, %v1055_v61  ;;  %v1078_v9 = vsel %vm512_vm5, %v996_v58, %v1056_v21 }
 0x50f   : > { %v1009_v22 = vsel %vm360_vm3, %v1006_v55, %v1008_v60  ;;  %v1010_v62 = vsel %vm360_vm3, %v1008_v60, %v1006_v55 }
 0x510   : > { %v1011_v16 = vmul.f32 %v1010_v62, %v1864_v34  ;;  %v1012_v17 = vmul.f32 %v1009_v22, %v1867_v35 }
 0x511   : > { %v1022_v6 = vpop.permute.xlu0 %1021 }
 0x512   : > { %v1079_v25 = vsel %vm512_vm5, %v1011_v16, %v1061_v63  ;;  %v1024_v8 = vpop.permute.xlu1 %1023  ;;  %v1080_v12 = vsel %vm512_vm5, %v1012_v17, %v1062_v5 }
 0x513   : > { %v1025_v13 = vsel %vm404_vm4, %v1022_v6, %v1024_v8  ;;  %v1026_v14 = vsel %vm404_vm4, %v1024_v8, %v1022_v6  ;;  %v1454_v15 = vpack.c.bf16 %v1080_v12, %v1078_v9  ;;  %v1456_v34 = vpack.c.bf16 %v1079_v25, %v1077_v24 }
 0x514   : > { %v1027_v18 = vmul.f32 %v1025_v13, %v1886_v51  ;;  %v1028_v23 = vmul.f32 %v1026_v14, %v1889_v52 }
 0x515   : > { %1455 = vmatprep.subr.bf16.mxu1 %v1454_v15  ;;  %v1038_v35 = vpop.permute.xlu0 %1037 }
 0x516   : > { %v1040_v26 = vpop.permute.xlu1 %1039  ;;  %1457 = vmatpush1.bf16.msra.mxu1 %v1456_v34  ;;  %v1067_v33 = vrot.slane %v1027_v18, 4  ;;  %v1068_v36 = vrot.slane %v1028_v23, 4 }
 0x517   : > { %v1041_v27 = vsel %vm448_vm6, %v1038_v35, %v1040_v26  ;;  %v1042_v28 = vsel %vm448_vm6, %v1040_v26, %v1038_v35 }
 0x518   : > { %v1043_v29 = vmul.f32 %v1041_v27, %v1904_v3  ;;  %v1044_v30 = vmul.f32 %v1042_v28, %v1907_v4  ;;  %v1081_v3 = vsel %vm512_vm5, %v2163_v37, %v1067_v33  ;;  %v1082_v11 = vsel %vm512_vm5, %v2165_v38, %v1068_v36  ;;  %v986_v38 = vld [vmem:[#allocation2 + $0xc] sm:$0xf] }
 0x519   : > { %v1030_v31 = vpop.permute.xlu0 %1029 }
 0x51a   : > { %v1032_v2 = vpop.permute.xlu1 %1031  ;;  %v1073_v40 = vrot.slane %v1043_v29, 4  ;;  %v1074_v41 = vrot.slane %v1044_v30, 4 }
 0x51b   : > { %v1033_v51 = vsel %vm426_vm7, %v1030_v31, %v1032_v2  ;;  %v1034_v52 = vsel %vm426_vm7, %v1032_v2, %v1030_v31 }
 0x51c   : > { %v1035_v59 = vmul.f32 %v1033_v51, %v1922_v19  ;;  %v1036_v42 = vmul.f32 %v1034_v52, %v1925_v20 }
 0x51d   : > { %v1046_v57 = vpop.permute.xlu0 %1045 }
 0x51e   : > { %v1083_v4 = vsel %vm512_vm5, %v1035_v59, %v1073_v40  ;;  %v1048_v43 = vpop.permute.xlu1 %1047  ;;  %v1084_v44 = vsel %vm512_vm5, %v1036_v42, %v1074_v41 }
 0x51f   : > { %v1050_v45 = vsel %vm470_vm8, %v1048_v43, %v1046_v57  ;;  %v1458_v46 = vpack.c.bf16 %v1084_v44, %v1082_v11  ;;  %v1460_v19 = vpack.c.bf16 %v1083_v4, %v1081_v3  ;;  %v1049_v10 = vsel %vm470_vm8, %v1046_v57, %v1048_v43 }
 0x520   : > { %v1052_v20 = vmul.f32 %v1050_v45, %v1936_v32  ;;  %v1051_v37 = vmul.f32 %v1049_v10, %v1941_v39  ;;  %v1179_v39 = vld [vmem:[%s2322_s4] sm:$0x1f] }
 0x521   : > { %1459 = vmatprep.subr.bf16.mxu1 %v1458_v46 }
 0x522   : > { %1461 = vmatpush1.bf16.msra.mxu1 %v1460_v19 }
 0x523   : > { %1416 = vmatprep.subr.msk.mxu1 %vm512_vm5, %v1052_v20 }
 0x526   : > { %1417 = vmatpush1.msk.msra.mxu1 %vm512_vm5, %v1051_v37 }
 0x527   : > { %1418 = vmatmul.mubr.msk.f32.vlgmr.msra.gmra.mrb[2].mxu1 %vm526_vm9, %v986_v38 }
 0x52e   : > { %v1088_v0 = vpop.permute.xlu0 %1087 }
 0x5fa   : > { %v1165_v1 = vpop.f32.mrb[2].mxu1 }
 0x5fb   : > { %v1166_v49 = vadd.f32 %v1165_v1, %v1088_v0  ;;  %v1167_v50 = vpop.f32.mrb[3].mxu1 }
 0x5fc   : > { %v1168_v32 = vadd.f32 %v1167_v50, %v1088_v0 }
 0x5fd   : > { %v1170_v7 = vadd.f32 %v1166_v49, %v2062_v47 }
 0x5fe   : > { %v1171_v53 = vadd.f32 %v1168_v32, %v2064_v48 }
 0x5ff   : > { %v1172_v54 = vmax.f32 %v1170_v7, 0.0 }
 0x600   : > { %v1173_v55 = vmax.f32 %v1171_v53, 0.0 }
 0x602   : > { %v1176_v56 = vcombine.low %v1172_v54, %v1173_v55  ;;  %1419 = vmatprep.subr.msk.mxu0 %vm512_vm5, %v1173_v55 }
 0x603   : > { %1420 = vmatpush1.msk.msra.mxu0 %vm512_vm5, %v1172_v54 }
 0x604   : > { %1421 = vmatmul.mubr.msk.f32.vlgmr.msra.gmra.mrb[4].mxu0 %vm1186_vm10, %v1179_v39  ;;  %1178 = vst [vmem:[%s287_s17] sm:$0xff] %v1176_v56 }
 0x605   : > { %1568 = shalt.err (!%p1565_p7)
}
 0x606   : > { %s1569_s28 = scalar_lea.hbm %s2278_s13, 128  ;;  %s1573_s17 = scalar_lea.hbm %s2324_s6, 256 }
 0x607   : > { %p1570_p8 = scmp.ne.s32.totalorder %s2278_s13, %s1569_s28  ;;  %p1574_p1 = scmp.lt.u32.totalorder %s2278_s13, %s2324_s6 }
 0x608   : > { %p1575_p0 = scmp.lt.u32.totalorder %s1573_s17, %s1569_s28  ;;  %p1577_p6 = scmp.lt.u32.totalorder %s1569_s28, %s2278_s13 }
 0x609   : > { %p1571_p11 = pnand %p1570_p8, %p2339_p9 }
 0x60a   : > { %p1576_p5 = por %p1575_p0, %p1574_p1 }
 0x60b   : > { %p1572_p13 = pneg %p1571_p11 }
 0x60c   : > { %p1578_p10 = por %p1577_p6, %p1576_p5 }
 0x60e   : > { %p1579_p12 = pnand %p1578_p10, %p1572_p13 }
 0x610   : > { %1582 = shalt.err (!%p1579_p12)
}
 0x611   : > { %1466 = dma.vmem_to_hbm [thread:$0]  (%p2339_p9), %s1288_s19, 128, %s2278_s13, %s1268_s21   ;;  %v1184_v47 = vpop.permute.xlu1 %1183 }
 0x612   : > { %s1428_s14 = sshll.u32 %s1762_s18, 4 }
 0x613   : > { %s304_s9 = scalar_lea.vmem %s2325_s7, %s1428_s14 }
 0x6d7   : > { %v1260_v48 = vpop.f32.mrb[4].mxu0 }
 0x6d8   : > { %v1261_v58 = vadd.f32 %v1260_v48, %v1184_v47  ;;  %v1262_v60 = vpop.f32.mrb[5].mxu0 }
 0x6d9   : > { %v1263_v61 = vadd.f32 %v1262_v60, %v1184_v47 }
 0x6da   : > { %1265 = vst [vmem:[%s304_s9] sm:$0x1f] %v1261_v58 }
 0x6db   : > { %1266 = vst [vmem:[%s304_s9 + $0x8] sm:$0x1f] %v1263_v61 }
 0x6dc PF: > { %p1478_p2 = scmp.ge.s32.totalorder %s1621_s27, 2  ;;  %s1302_s11 = sand.u32 1, %s1609_s24  }
 0x6dd   : > { %p2340_p3 = scmp.ne.s32.totalorder %s2332_s12, 0  ;;  %s1303_s18 = scalar_lea.sflag [#allocation4], %s1302_s11 }
 0x6df   : > { %p1473_p9 = pnand %p1478_p2, %p2340_p3 }
 0x6e1   : > { %1604 = dma.done.wait (!%p1473_p9), %s1303_s18, 128  }
 0x6e2   : > { %1606 = vsyncadd (!%p1473_p9), %s1303_s18, 4294967168  ;;  %p19_p4 = scmp.ge.s32.totalorder %s1702_s30, 4   ;;  %s2341_s24 = smov %s1613_s25 }
 0x6e3   : > { %s2342_s25 = smov %s1617_s26  ;;  %s2343_s26 = smov %s1713_s10 }
 0x6e4   : > { %s2344_s27 = smov %s1702_s30  ;;  %21 = sbr.rel (!%p19_p4) target bundleno = 4 (0x4), region = 109 }
 0x6eb   :  { %1316 = vsyncpa [#allocation3], 1 }
 0x6ec   :  { %1318 = vsyncpa [#allocation3 + $0x1], 1 }
 0x6ed   :  { %1319 = vsyncpa [#allocation4], 1 }
 0x6ee   :  { %1321 = vsyncpa [#allocation4 + $0x1], 1 }

</bundles_post_ra>
